<compile_context>
chip_gen: v7x
topology: tpu7x:2x2x1
jax: 0.10.0
libtpu: 0.0.40
codegen_flags: <defaults>
</compile_context>

<pallas_src>
import functools

import jax
import jax.numpy as jnp
from jax import lax
from jax.experimental import pallas as pl
from jax.experimental.pallas import tpu as pltpu

C_IN = 768
C_OUT = 128
KSIZE = 5
POOL = 2
HALO = KSIZE - 1           # conv look-ahead rows per tile
HALO_CHUNK = 8             # halo is fetched as one sublane-aligned 8-row block
MIN_TILE = 16              # tile % 16 == 0  ->  pooled rows per tile % 8 == 0


def _choose_tile(l_pool, tile_cap, batch):
    """Conv-output rows per grid step (multiple of 16; tile_cap when tiled)."""
    need = POOL * l_pool                       # conv rows actually consumed
    if need <= tile_cap:
        tile = max(MIN_TILE, ((need + MIN_TILE - 1) // MIN_TILE) * MIN_TILE)
        # Keep both TensorCores busy on 2-TC chips (v7x) when batch == 1:
        # prefer two L-tiles over one oversized tile.
        if batch == 1 and tile >= 4 * MIN_TILE:
            tile = ((tile // 2 + MIN_TILE - 1) // MIN_TILE) * MIN_TILE
        return tile
    return tile_cap                            # tile_cap is a multiple of 16


def _audio_cnn_kernel(x_ref, h_ref, w_ref, b_ref, o_ref, xs_ref, *, tile):
    # x_ref : (1, tile, C_IN)            bf16  main rows of this L-tile
    # h_ref : (1, 8, C_IN)               bf16  first 8 rows of the next tile
    # w_ref : (C_IN, KSIZE * C_OUT)      bf16  tap-concatenated weights
    # b_ref : (1, C_OUT)                 f32
    # o_ref : (1, tile // POOL, C_OUT)   output dtype
    # xs_ref: (16, C_IN)                 bf16  scratch: tile tail ++ halo

    # One wide MXU matmul against all 5 taps at once, f32 accumulation.
    x = x_ref[0]                                                    # (tile, 768)
    y = jnp.dot(x, w_ref[...], preferred_element_type=jnp.float32)  # (tile, 640)

    # Combine taps: acc[r] = sum_k y_k[r + k].  roll (XLU) keeps the slices
    # lane/sublane aligned; the wrapped last HALO rows are repaired below.
    acc = y[:, :C_OUT]
    for k in range(1, KSIZE):                                       # unrolled
        acc = acc + pltpu.roll(y[:, k * C_OUT:(k + 1) * C_OUT],
                               shift=tile - k, axis=0)

    # Tail repair: last 8 conv rows need the halo.  Stitch a tiny 16x768
    # window (last 8 tile rows + 8 halo rows) and redo them with one small
    # matmul (~24 KiB of VMEM traffic vs. the old full-tile stitch).
    xs_ref[pl.ds(0, HALO_CHUNK), :] = x_ref[0, pl.ds(tile - HALO_CHUNK,
                                                     HALO_CHUNK), :]
    xs_ref[pl.ds(HALO_CHUNK, HALO_CHUNK), :] = h_ref[0]
    yt = jnp.dot(xs_ref[...], w_ref[...],
                 preferred_element_type=jnp.float32)                # (16, 640)
    fix = yt[:, :C_OUT]
    for k in range(1, KSIZE):
        fix = fix + pltpu.roll(yt[:, k * C_OUT:(k + 1) * C_OUT],
                               shift=2 * HALO_CHUNK - k, axis=0)
    # fix rows 0..7 are conv rows tile-8 .. tile-1.
    acc = jnp.concatenate([acc[:tile - HALO_CHUNK, :], fix[:HALO_CHUNK, :]],
                          axis=0)

    # Bias + ReLU + MaxPool1d(2) along the row (length) axis.
    acc = jnp.maximum(acc + b_ref[...], 0.0)
    pooled = jnp.max(acc.reshape(tile // POOL, POOL, C_OUT), axis=1)
    o_ref[0] = pooled.astype(o_ref.dtype)


def audio_cnn_forward_nlc(x_nlc, weight, bias, *, tile_cap=1024, out_dtype=None):
    """Channels-last forward.  x_nlc: (N, L, 768) -> (N, (L-4)//2, 128)."""
    n, length, c_in = x_nlc.shape
    assert c_in == C_IN
    assert tile_cap % MIN_TILE == 0
    l_out = length - (KSIZE - 1)
    if l_out < POOL:
        raise ValueError(f"input length {length} too short; need >= {KSIZE + 1}")
    l_pool = l_out // POOL

    tile = _choose_tile(l_pool, tile_cap, n)  # conv rows per grid step
    p = tile // POOL                          # pooled rows per grid step
    t = pl.cdiv(l_pool, p)                    # number of L tiles
    l_pad = t * tile + HALO_CHUNK             # padded input length

    # bf16 cast + zero pad (fuses with the caller-side transpose for NCW).
    x_pad = jnp.pad(x_nlc.astype(jnp.bfloat16),
                    ((0, 0), (0, l_pad - length), (0, 0)))

    # Tap-concatenated weights: columns [k*128, (k+1)*128) hold tap k.
    w_cat = jnp.transpose(weight, (1, 2, 0)).reshape(
        C_IN, KSIZE * C_OUT).astype(jnp.bfloat16)
    b_2d = bias.reshape(1, C_OUT).astype(jnp.float32)

    out_dtype = x_nlc.dtype if out_dtype is None else out_dtype
    kernel = functools.partial(_audio_cnn_kernel, tile=tile)

    out = pl.pallas_call(
        kernel,
        out_shape=jax.ShapeDtypeStruct((n, t * p, C_OUT), out_dtype),
        grid_spec=pltpu.PrefetchScalarGridSpec(
            num_scalar_prefetch=0,
            grid=(n, t),
            in_specs=[
                # Main L-tile of this grid step.
                pl.BlockSpec((1, tile, C_IN), lambda b, i: (b, i, 0)),
                # 8-row halo = first rows of the next tile, same HBM array.
                pl.BlockSpec((1, HALO_CHUNK, C_IN),
                             lambda b, i: (b, (i + 1) * (tile // HALO_CHUNK), 0)),
                pl.BlockSpec((C_IN, KSIZE * C_OUT), lambda b, i: (0, 0)),
                pl.BlockSpec((1, C_OUT), lambda b, i: (0, 0)),
            ],
            out_specs=pl.BlockSpec((1, p, C_OUT), lambda b, i: (b, i, 0)),
            scratch_shapes=[pltpu.VMEM((2 * HALO_CHUNK, C_IN), jnp.bfloat16)],
        ),
        compiler_params=pltpu.CompilerParams(
            dimension_semantics=("parallel", "parallel"),
            vmem_limit_bytes=48 * 1024 * 1024),
    )(x_pad, x_pad, w_cat, b_2d)

    return out[:, :l_pool, :]                 # drop padded pooled rows


def audio_cnn_forward(x_ncw, weight, bias, *, tile_cap=1024, out_dtype=None):
    """PyTorch-layout forward.  x_ncw: (N, 768, L) -> (N, 128, (L-4)//2)."""
    out_nlc = audio_cnn_forward_nlc(jnp.transpose(x_ncw, (0, 2, 1)),
                                    weight, bias, tile_cap=tile_cap,
                                    out_dtype=out_dtype)
    return jnp.transpose(out_nlc, (0, 2, 1))


def _reference(x_ncw, weight, bias):
    # Pure-JAX reference: Conv1d (NCW, OIW) + bias + ReLU + MaxPool1d(2).
    y = lax.conv_general_dilated(
        x_ncw, weight, window_strides=(1,), padding="VALID",
        dimension_numbers=("NCH", "OIH", "NCH"),
        precision=lax.Precision.HIGHEST)
    y = jnp.maximum(y + bias[None, :, None], 0.0)
    n, c, l = y.shape
    lp = l // POOL
    return y[:, :, :lp * POOL].reshape(n, c, lp, POOL).max(axis=-1)


if __name__ == "__main__":
    key = jax.random.PRNGKey(0)
    kx, kw, kb = jax.random.split(key, 3)

    # Deterministic synthetic parameters (PyTorch-style uniform bound).
    bound = 1.0 / (C_IN * KSIZE) ** 0.5
    weight = jax.random.uniform(kw, (C_OUT, C_IN, KSIZE), jnp.float32,
                                -bound, bound)
    bias = jax.random.uniform(kb, (C_OUT,), jnp.float32, -bound, bound)

    # Small input consistent with the module: batch=2, 768 channels, length=16.
    x = jax.random.normal(kx, (2, C_IN, 16), jnp.float32)

    fwd = jax.jit(audio_cnn_forward)
    out = jax.block_until_ready(fwd(x, weight, bias))

    # The kernel feeds the MXU bf16 activations/weights with f32 accumulation,
    # so the apples-to-apples reference rounds its inputs to bf16 the same way.
    x_r = x.astype(jnp.bfloat16).astype(jnp.float32)
    w_r = weight.astype(jnp.bfloat16).astype(jnp.float32)
    ref = _reference(x_r, w_r, bias)

    assert out.shape == ref.shape == (2, C_OUT, (16 - 4) // 2), out.shape
    assert jnp.allclose(out, ref, atol=2e-3, rtol=2e-3), \
        float(jnp.max(jnp.abs(out - ref)))

    print("KERNEL_OK")
</pallas_src>

<mosaic_0001>
module attributes {stable_mosaic.version = 11 : i64} {
  func.func @_audio_cnn_kernel(%arg0: i32, %arg1: i32, %arg2: memref<1x16x768xbf16, #tpu.memory_space<vmem>>, %arg3: memref<1x8x768xbf16, #tpu.memory_space<vmem>>, %arg4: memref<768x640xbf16, #tpu.memory_space<vmem>>, %arg5: memref<1x128xf32, #tpu.memory_space<vmem>>, %arg6: memref<1x8x128xf32, #tpu.memory_space<vmem>>, %arg7: memref<16x768xbf16, #tpu.memory_space<vmem>>) attributes {dimension_semantics = [#tpu.dimension_semantics<parallel>, #tpu.dimension_semantics<parallel>], iteration_bounds = array<i64: 2, 1>, scalar_prefetch = 0 : i64, scratch_operands = 1 : i64, tpu.core_type = #tpu.core_type<tc>, window_params = [{transform_indices = @transform_0, window_bounds = array<i64: 1, 16, 768>}, {transform_indices = @transform_1, window_bounds = array<i64: 1, 8, 768>}, {pipeline_mode = #tpu.pipeline_mode<synchronous>, transform_indices = @transform_2, window_bounds = array<i64: 768, 640>}, {pipeline_mode = #tpu.pipeline_mode<synchronous>, transform_indices = @transform_3, window_bounds = array<i64: 1, 128>}, {transform_indices = @transform_4, window_bounds = array<i64: 1, 8, 128>}]} {
    %c0 = arith.constant 0 : index
    %c0_0 = arith.constant 0 : index
    %c0_1 = arith.constant 0 : index
    %0 = vector.load %arg2[%c0, %c0_0, %c0_1] : memref<1x16x768xbf16, #tpu.memory_space<vmem>>, vector<1x16x768xbf16>
    %1 = vector.shape_cast %0 : vector<1x16x768xbf16> to vector<16x768xbf16>
    %c0_2 = arith.constant 0 : index
    %c0_3 = arith.constant 0 : index
    %2 = vector.load %arg4[%c0_2, %c0_3] : memref<768x640xbf16, #tpu.memory_space<vmem>>, vector<768x640xbf16>
    %cst = arith.constant dense<0.000000e+00> : vector<16x640xf32>
    %3 = tpu.matmul %1, %2, %cst {dimension_numbers = #tpu.dot_dimension_numbers<[1], [0], [0], [1], [0, 0, 1, 1], [], []>} : vector<16x768xbf16>, vector<768x640xbf16>, vector<16x640xf32> -> vector<16x640xf32>
    %4 = vector.extract_strided_slice %3 {offsets = [0, 0], sizes = [16, 128], strides = [1, 1]} : vector<16x640xf32> to vector<16x128xf32>
    %5 = vector.extract_strided_slice %3 {offsets = [0, 128], sizes = [16, 128], strides = [1, 1]} : vector<16x640xf32> to vector<16x128xf32>
    %c15_i32 = arith.constant 15 : i32
    %6 = tpu.dynamic_rotate %5 by %c15_i32 dim 0 : vector<16x128xf32>, i32 -> vector<16x128xf32>
    %7 = arith.addf %4, %6 : vector<16x128xf32>
    %8 = vector.extract_strided_slice %3 {offsets = [0, 256], sizes = [16, 128], strides = [1, 1]} : vector<16x640xf32> to vector<16x128xf32>
    %c14_i32 = arith.constant 14 : i32
    %9 = tpu.dynamic_rotate %8 by %c14_i32 dim 0 : vector<16x128xf32>, i32 -> vector<16x128xf32>
    %10 = arith.addf %7, %9 : vector<16x128xf32>
    %11 = vector.extract_strided_slice %3 {offsets = [0, 384], sizes = [16, 128], strides = [1, 1]} : vector<16x640xf32> to vector<16x128xf32>
    %c13_i32 = arith.constant 13 : i32
    %12 = tpu.dynamic_rotate %11 by %c13_i32 dim 0 : vector<16x128xf32>, i32 -> vector<16x128xf32>
    %13 = arith.addf %10, %12 : vector<16x128xf32>
    %14 = vector.extract_strided_slice %3 {offsets = [0, 512], sizes = [16, 128], strides = [1, 1]} : vector<16x640xf32> to vector<16x128xf32>
    %c12_i32 = arith.constant 12 : i32
    %15 = tpu.dynamic_rotate %14 by %c12_i32 dim 0 : vector<16x128xf32>, i32 -> vector<16x128xf32>
    %16 = arith.addf %13, %15 : vector<16x128xf32>
    %c0_4 = arith.constant 0 : index
    %c8 = arith.constant 8 : index
    %c0_5 = arith.constant 0 : index
    %17 = vector.load %arg2[%c0_4, %c8, %c0_5] : memref<1x16x768xbf16, #tpu.memory_space<vmem>>, vector<1x8x768xbf16>
    %18 = vector.shape_cast %17 : vector<1x8x768xbf16> to vector<8x768xbf16>
    %c0_6 = arith.constant 0 : index
    %c0_7 = arith.constant 0 : index
    %19 = vector.load %arg7[%c0_6, %c0_7] : memref<16x768xbf16, #tpu.memory_space<vmem>>, vector<8x768xbf16>
    tpu.vector_store %arg7[%c0_6, %c0_7], %18 {strides = array<i32>} : memref<16x768xbf16, #tpu.memory_space<vmem>>, vector<8x768xbf16>,
    %c0_8 = arith.constant 0 : index
    %c0_9 = arith.constant 0 : index
    %c0_10 = arith.constant 0 : index
    %20 = vector.load %arg3[%c0_8, %c0_9, %c0_10] : memref<1x8x768xbf16, #tpu.memory_space<vmem>>, vector<1x8x768xbf16>
    %21 = vector.shape_cast %20 : vector<1x8x768xbf16> to vector<8x768xbf16>
    %c8_11 = arith.constant 8 : index
    %c0_12 = arith.constant 0 : index
    %22 = vector.load %arg7[%c8_11, %c0_12] : memref<16x768xbf16, #tpu.memory_space<vmem>>, vector<8x768xbf16>
    tpu.vector_store %arg7[%c8_11, %c0_12], %21 {strides = array<i32>} : memref<16x768xbf16, #tpu.memory_space<vmem>>, vector<8x768xbf16>,
    %c0_13 = arith.constant 0 : index
    %c0_14 = arith.constant 0 : index
    %23 = vector.load %arg7[%c0_13, %c0_14] : memref<16x768xbf16, #tpu.memory_space<vmem>>, vector<16x768xbf16>
    %c0_15 = arith.constant 0 : index
    %c0_16 = arith.constant 0 : index
    %24 = vector.load %arg4[%c0_15, %c0_16] : memref<768x640xbf16, #tpu.memory_space<vmem>>, vector<768x640xbf16>
    %cst_17 = arith.constant dense<0.000000e+00> : vector<16x640xf32>
    %25 = tpu.matmul %23, %24, %cst_17 {dimension_numbers = #tpu.dot_dimension_numbers<[1], [0], [0], [1], [0, 0, 1, 1], [], []>} : vector<16x768xbf16>, vector<768x640xbf16>, vector<16x640xf32> -> vector<16x640xf32>
    %26 = vector.extract_strided_slice %25 {offsets = [0, 0], sizes = [16, 128], strides = [1, 1]} : vector<16x640xf32> to vector<16x128xf32>
    %27 = vector.extract_strided_slice %25 {offsets = [0, 128], sizes = [16, 128], strides = [1, 1]} : vector<16x640xf32> to vector<16x128xf32>
    %c15_i32_18 = arith.constant 15 : i32
    %28 = tpu.dynamic_rotate %27 by %c15_i32_18 dim 0 : vector<16x128xf32>, i32 -> vector<16x128xf32>
    %29 = arith.addf %26, %28 : vector<16x128xf32>
    %30 = vector.extract_strided_slice %25 {offsets = [0, 256], sizes = [16, 128], strides = [1, 1]} : vector<16x640xf32> to vector<16x128xf32>
    %c14_i32_19 = arith.constant 14 : i32
    %31 = tpu.dynamic_rotate %30 by %c14_i32_19 dim 0 : vector<16x128xf32>, i32 -> vector<16x128xf32>
    %32 = arith.addf %29, %31 : vector<16x128xf32>
    %33 = vector.extract_strided_slice %25 {offsets = [0, 384], sizes = [16, 128], strides = [1, 1]} : vector<16x640xf32> to vector<16x128xf32>
    %c13_i32_20 = arith.constant 13 : i32
    %34 = tpu.dynamic_rotate %33 by %c13_i32_20 dim 0 : vector<16x128xf32>, i32 -> vector<16x128xf32>
    %35 = arith.addf %32, %34 : vector<16x128xf32>
    %36 = vector.extract_strided_slice %25 {offsets = [0, 512], sizes = [16, 128], strides = [1, 1]} : vector<16x640xf32> to vector<16x128xf32>
    %c12_i32_21 = arith.constant 12 : i32
    %37 = tpu.dynamic_rotate %36 by %c12_i32_21 dim 0 : vector<16x128xf32>, i32 -> vector<16x128xf32>
    %38 = arith.addf %35, %37 : vector<16x128xf32>
    %39 = vector.extract_strided_slice %16 {offsets = [0, 0], sizes = [8, 128], strides = [1, 1]} : vector<16x128xf32> to vector<8x128xf32>
    %40 = vector.extract_strided_slice %38 {offsets = [0, 0], sizes = [8, 128], strides = [1, 1]} : vector<16x128xf32> to vector<8x128xf32>
    %41 = tpu.concatenate %39, %40 in 0 : vector<8x128xf32>, vector<8x128xf32> -> vector<16x128xf32>
    %c0_22 = arith.constant 0 : index
    %c0_23 = arith.constant 0 : index
    %42 = vector.load %arg5[%c0_22, %c0_23] : memref<1x128xf32, #tpu.memory_space<vmem>>, vector<1x128xf32>
    %43 = vector.broadcast %42 : vector<1x128xf32> to vector<16x128xf32>
    %44 = arith.addf %41, %43 : vector<16x128xf32>
    %cst_24 = arith.constant 0.000000e+00 : f32
    %45 = vector.broadcast %cst_24 : f32 to vector<16x128xf32>
    %46 = arith.maximumf %44, %45 : vector<16x128xf32>
    %47 = vector.shape_cast %46 : vector<16x128xf32> to vector<8x2x128xf32>
    %cst_25 = arith.constant dense<0xFF800000> : vector<8x128xf32>
    %48 = vector.multi_reduction <maximumf>, %47, %cst_25 [1] : vector<8x2x128xf32> to vector<8x128xf32>
    %c0_26 = arith.constant 0 : index
    %c0_27 = arith.constant 0 : index
    %c0_28 = arith.constant 0 : index
    %49 = vector.load %arg6[%c0_26, %c0_27, %c0_28] : memref<1x8x128xf32, #tpu.memory_space<vmem>>, vector<1x8x128xf32>
    %50 = vector.shape_cast %49 : vector<1x8x128xf32> to vector<8x128xf32>
    %51 = vector.shape_cast %48 : vector<8x128xf32> to vector<1x8x128xf32>
    tpu.vector_store %arg6[%c0_26, %c0_27, %c0_28], %51 {strides = array<i32>} : memref<1x8x128xf32, #tpu.memory_space<vmem>>, vector<1x8x128xf32>,
    return
  }
  func.func @transform_0(%arg0: i32, %arg1: i32) -> (i32, i32, i32) {
    %c0_i32 = arith.constant 0 : i32
    %c0_i32_0 = arith.constant 0 : i32
    return %arg0, %arg1, %c0_i32 : i32, i32, i32
  }
  func.func @transform_1(%arg0: i32, %arg1: i32) -> (i32, i32, i32) {
    %c1_i32 = arith.constant 1 : i32
    %0 = arith.addi %arg1, %c1_i32 : i32
    %c2_i32 = arith.constant 2 : i32
    %1 = arith.muli %0, %c2_i32 : i32
    %c0_i32 = arith.constant 0 : i32
    %c0_i32_0 = arith.constant 0 : i32
    return %arg0, %1, %c0_i32 : i32, i32, i32
  }
  func.func @transform_2(%arg0: i32, %arg1: i32) -> (i32, i32) {
    %c0_i32 = arith.constant 0 : i32
    %c0_i32_0 = arith.constant 0 : i32
    %c0_i32_1 = arith.constant 0 : i32
    return %c0_i32, %c0_i32_0 : i32, i32
  }
  func.func @transform_3(%arg0: i32, %arg1: i32) -> (i32, i32) {
    %c0_i32 = arith.constant 0 : i32
    %c0_i32_0 = arith.constant 0 : i32
    %c0_i32_1 = arith.constant 0 : i32
    return %c0_i32, %c0_i32_0 : i32, i32
  }
  func.func @transform_4(%arg0: i32, %arg1: i32) -> (i32, i32, i32) {
    %c0_i32 = arith.constant 0 : i32
    %c0_i32_0 = arith.constant 0 : i32
    return %arg0, %arg1, %c0_i32 : i32, i32, i32
  }
}

</mosaic_0001>

<bundles_post_ra>
// kernel: audio_cnn_forward.1
= control target key start
LH: loop header
LB: loop body
LE: loop exit
PB: predicated region body
PF: predicated region fallthrough
CT: control target
= control target key end

     0   :  { %s5930_s15 = smov 0   ;;  %s5932_s16 = smov 0   ;;  %s7563_s0 = inlined_call_operand.vmem [shape: bf16[2,24,768], index: 0, kind: input, shape index: {}, may-alias: {0,1}]   ;;  %s7564_s1 = inlined_call_operand.vmem [shape: bf16[2,24,768], index: 1, kind: input, shape index: {}, may-alias: {0,1}]   ;;  %s7565_s2 = inlined_call_operand.vmem [shape: bf16[768,640], index: 2, kind: input, shape index: {}]   ;;  %s7566_s3 = inlined_call_operand.vmem [shape: f32[1,128], index: 3, kind: input, shape index: {}]   ;;  %s7567_s4 = inlined_call_operand.vmem [shape: f32[2,8,128], index: 4, kind: output, shape index: {}]  }
   0x1   :  { %s5934_s17 = smov 0  }
   0x2 LB: > { %s26_s18 = sadd.s32 1, %s5898_s16  ;;  %p4506_p0 = scmp.ge.s32.totalorder %s5902_s17, 1  ;;  %s5902_s17 = sphi %s5934_s17, %s14_s17   ;;  %s5898_s16 = sphi %s5932_s16, %s7569_s16   ;;  %s5894_s15 = sphi %s5930_s15, %s7568_s15  }
   0x3   : > { %p28_p1 = scmp.ge.s32.totalorder %s26_s18, 2  ;;  %p218_p2 = scmp.lt.s32.totalorder %s5902_s17, 3 }
   0x5   : > { %s7571_s18 = smov (%p28_p1, %s26_s18), 0  ;;  %p219_p3 = pnand %p4506_p0, %p218_p2 }
   0x6   : > { %v5189_v0 = vld [vmem:[%s7565_s2 + $0x4] ss:$20 sps:$4 sm:$0xff] (!%p219_p3)   ;;  %p273_p4 = scmp.lt.s32.totalorder (!%p219_p3), %s5894_s15, 1  ;;  %v5193_v2 = vld [vmem:[%s7565_s2] ss:$20 sps:$4 sm:$0xff] (!%p219_p3)   ;;  %vm4320_vm4 = vcmask (!%p219_p3), 1041408  }
   0x7   : > { %222 = sbr.rel (%p219_p3) target bundleno = 768 (0x300), region = 36  ;;  %v5191_v1 = vld [vmem:[%s7565_s2 + $0x284] ss:$20 sps:$4 sm:$0xff] (!%p219_p3)   ;;  %1881 = vmatprep.subr.bf16.mxu0 (!%p219_p3), %v5189_v0  ;;  %v5194_v3 = vld [vmem:[%s7565_s2 + $0x280] ss:$20 sps:$4 sm:$0xff] (!%p219_p3)   ;;  %vm4385_vm5 = vcmask (!%p219_p3), 1041409  }
   0x8   : > { %1923 = vmatprep.subr.bf16.mxu1 (!%p219_p3), %v5191_v1  ;;  %v5195_v4 = vld [vmem:[%s7565_s2 + $0x2c] ss:$20 sps:$4 sm:$0xff] (!%p219_p3)   ;;  %1882 = vmatpush1.bf16.msra.mxu0 (!%p219_p3), %v5193_v2  ;;  %v5199_v6 = vld [vmem:[%s7565_s2 + $0x28] ss:$20 sps:$4 sm:$0xff] (!%p219_p3)   ;;  %v5205_v10 = vld [vmem:[%s7565_s2 + $0x50] ss:$20 sps:$4 sm:$0xff] (!%p219_p3)  }
   0x9   : > { %1924 = vmatpush1.bf16.msra.mxu1 (!%p219_p3), %v5194_v3  ;;  %v5197_v5 = vld [vmem:[%s7565_s2 + $0x2ac] ss:$20 sps:$4 sm:$0xff] (!%p219_p3)   ;;  %1883 = vmatprep.subr.bf16.mxu0 (!%p219_p3), %v5195_v4  ;;  %v5200_v7 = vld [vmem:[%s7565_s2 + $0x2a8] ss:$20 sps:$4 sm:$0xff] (!%p219_p3)   ;;  %v5206_v11 = vld [vmem:[%s7565_s2 + $0x2d0] ss:$20 sps:$4 sm:$0xff] (!%p219_p3)  }
   0xa   : > { %1925 = vmatprep.subr.bf16.mxu1 (!%p219_p3), %v5197_v5  ;;  %v5201_v8 = vld [vmem:[%s7565_s2 + $0x54] ss:$20 sps:$4 sm:$0xff] (!%p219_p3)   ;;  %v5207_v12 = vld [vmem:[%s7565_s2 + $0x7c] ss:$20 sps:$4 sm:$0xff] (!%p219_p3)   ;;  %v5211_v14 = vld [vmem:[%s7565_s2 + $0x78] ss:$20 sps:$4 sm:$0xff] (!%p219_p3)  }
   0xb   : > { %v5203_v9 = vld [vmem:[%s7565_s2 + $0x2d4] ss:$20 sps:$4 sm:$0xff] (!%p219_p3)   ;;  %v5209_v13 = vld [vmem:[%s7565_s2 + $0x2fc] ss:$20 sps:$4 sm:$0xff] (!%p219_p3)   ;;  %v5212_v15 = vld [vmem:[%s7565_s2 + $0x2f8] ss:$20 sps:$4 sm:$0xff] (!%p219_p3)  }
   0xc   : > { %1884 = vmatpush1.bf16.msra.mxu0 (!%p219_p3), %v5199_v6  ;;  %v5213_v16 = vld [vmem:[%s7565_s2 + $0xa4] ss:$20 sps:$4 sm:$0xff] (!%p219_p3)   ;;  %v5217_v18 = vld [vmem:[%s7565_s2 + $0xa0] ss:$20 sps:$4 sm:$0xff] (!%p219_p3)   ;;  %v5223_v22 = vld [vmem:[%s7565_s2 + $0xc8] ss:$20 sps:$4 sm:$0xff] (!%p219_p3)  }
   0xd   : > { %1926 = vmatpush1.bf16.msra.mxu1 (!%p219_p3), %v5200_v7  ;;  %1885 = vmatprep.subr.bf16.mxu0 (!%p219_p3), %v5201_v8  ;;  %v5215_v17 = vld [vmem:[%s7565_s2 + $0x324] ss:$20 sps:$4 sm:$0xff] (!%p219_p3)   ;;  %v5218_v19 = vld [vmem:[%s7565_s2 + $0x320] ss:$20 sps:$4 sm:$0xff] (!%p219_p3)   ;;  %v5224_v23 = vld [vmem:[%s7565_s2 + $0x348] ss:$20 sps:$4 sm:$0xff] (!%p219_p3)  }
   0xe   : > { %s7573_s15 = smov (!%p273_p4, %s5894_s15), 1  ;;  %1927 = vmatprep.subr.bf16.mxu1 %v5203_v9  ;;  %v5219_v20 = vld [vmem:[%s7565_s2 + $0xcc] ss:$20 sps:$4 sm:$0xff]   ;;  %v5225_v24 = vld [vmem:[%s7565_s2 + $0xf4] ss:$20 sps:$4 sm:$0xff]   ;;  %vm4387_vm6 = vcmask 1042434  }
   0xf   : > { %v5221_v21 = vld [vmem:[%s7565_s2 + $0x34c] ss:$20 sps:$4 sm:$0xff]   ;;  %v5227_v25 = vld [vmem:[%s7565_s2 + $0x374] ss:$20 sps:$4 sm:$0xff]   ;;  %v5229_v26 = vld [vmem:[%s7565_s2 + $0xf0] ss:$20 sps:$4 sm:$0xff]  }
  0x10   : > { %1886 = vmatpush1.bf16.msra.mxu0 %v5205_v10  ;;  %v5230_v27 = vld [vmem:[%s7565_s2 + $0x370] ss:$20 sps:$4 sm:$0xff]   ;;  %v5235_v30 = vld [vmem:[%s7565_s2 + $0x118] ss:$20 sps:$4 sm:$0xff]   ;;  %v5241_v34 = vld [vmem:[%s7565_s2 + $0x140] ss:$20 sps:$4 sm:$0xff]  }
  0x11   : > { %1928 = vmatpush1.bf16.msra.mxu1 %v5206_v11  ;;  %1887 = vmatprep.subr.bf16.mxu0 %v5207_v12  ;;  %v5231_v28 = vld [vmem:[%s7565_s2 + $0x11c] ss:$20 sps:$4 sm:$0xff]   ;;  %v5236_v31 = vld [vmem:[%s7565_s2 + $0x398] ss:$20 sps:$4 sm:$0xff]   ;;  %v5242_v35 = vld [vmem:[%s7565_s2 + $0x3c0] ss:$20 sps:$4 sm:$0xff]  }
  0x12   : > { %1929 = vmatprep.subr.bf16.mxu1 %v5209_v13  ;;  %v5233_v29 = vld [vmem:[%s7565_s2 + $0x39c] ss:$20 sps:$4 sm:$0xff]   ;;  %v5237_v32 = vld [vmem:[%s7565_s2 + $0x144] ss:$20 sps:$4 sm:$0xff]   ;;  %v5243_v36 = vld [vmem:[%s7565_s2 + $0x16c] ss:$20 sps:$4 sm:$0xff]  }
  0x13   : > { %v5239_v33 = vld [vmem:[%s7565_s2 + $0x3c4] ss:$20 sps:$4 sm:$0xff]   ;;  %v5245_v37 = vld [vmem:[%s7565_s2 + $0x3ec] ss:$20 sps:$4 sm:$0xff]   ;;  %v5247_v38 = vld [vmem:[%s7565_s2 + $0x168] ss:$20 sps:$4 sm:$0xff]  }
  0x14   : > { %1888 = vmatpush1.bf16.msra.mxu0 %v5211_v14  ;;  %s5161_s5 = smul.u32 72, %s7573_s15  ;;  %v5248_v39 = vld [vmem:[%s7565_s2 + $0x3e8] ss:$20 sps:$4 sm:$0xff]   ;;  %v5253_v42 = vld [vmem:[%s7565_s2 + $0x190] ss:$20 sps:$4 sm:$0xff]   ;;  %vm4389_vm7 = vcmask 1043459  }
  0x15   : > { %1930 = vmatpush1.bf16.msra.mxu1 %v5212_v15  ;;  %1889 = vmatprep.subr.bf16.mxu0 %v5213_v16  ;;  %v5249_v40 = vld [vmem:[%s7565_s2 + $0x194] ss:$20 sps:$4 sm:$0xff]   ;;  %v5254_v43 = vld [vmem:[%s7565_s2 + $0x410] ss:$20 sps:$4 sm:$0xff]   ;;  %v5259_v46 = vld [vmem:[%s7565_s2 + $0x1b8] ss:$20 sps:$4 sm:$0xff]  }
  0x16   : > { %1931 = vmatprep.subr.bf16.mxu1 %v5215_v17  ;;  %v5251_v41 = vld [vmem:[%s7565_s2 + $0x414] ss:$20 sps:$4 sm:$0xff]   ;;  %s5012_s12 = sadd.s32 48, %s5161_s5  ;;  %s6086_s23 = scalar_lea.vmem %s7563_s0, %s5161_s5  ;;  %v5255_v44 = vld [vmem:[%s7565_s2 + $0x1bc] ss:$20 sps:$4 sm:$0xff]   ;;  %vm4391_vm8 = vcmask 1044484  }
  0x17   : > { %s298_s28 = scalar_lea.vmem %s7564_s1, %s5012_s12  ;;  %v5257_v45 = vld [vmem:[%s7565_s2 + $0x43c] ss:$20 sps:$4 sm:$0xff]   ;;  %v5260_v47 = vld [vmem:[%s7565_s2 + $0x438] ss:$20 sps:$4 sm:$0xff]   ;;  %v6104_v48 = vld [vmem:[%s6086_s23] sm:$0xff]  ;;  %s4509_s25 = sshll.u32 %s7573_s15, 3 }
  0x18   : > { %1890 = vmatpush1.bf16.msra.mxu0 %v5217_v18  ;;  %v5261_v49 = vld [vmem:[%s7565_s2 + $0x1e4] ss:$20 sps:$4 sm:$0xff]   ;;  %v2300_v52 = vld [vmem:[%s298_s28 + $0x8] sm:$0xff]  ;;  %v2301_v56 = vld [vmem:[%s298_s28 + $0x10] sm:$0xff]  ;;  %vm4393_vm9 = vcmask 1045509   ;;  %vm4395_vm10 = vcmask 1046534  }
  0x19   : > { %1932 = vmatpush1.bf16.msra.mxu1 %v5218_v19  ;;  %1891 = vmatprep.subr.bf16.mxu0 %v5219_v20  ;;  %v6110_v50 = vld [vmem:[%s6086_s23 + $0x18] sm:$0xff]  ;;  %v2299_v51 = vld [vmem:[%s298_s28] sm:$0xff]  ;;  %v310_v57 = vld [vmem:[%s6086_s23 + $0x8] sm:$0xff]  ;;  %v4764_v62 = vcombine.low %v2300_v52, %v2300_v52  ;;  %v4765_v63 = vcombine.high %v2300_v52, %v2300_v52  ;;  %v4766_v0 = vcombine.low %v2301_v56, %v2301_v56  ;;  %vm4397_vm11 = vcmask 1047559   ;;  %s307_s28 = scalar_lea.vmem %s7567_s4, %s4509_s25 }
  0x1a   : > { %1933 = vmatprep.subr.bf16.mxu1 %v5221_v21  ;;  %v6114_v53 = vcombine.high %v6104_v48, %v6110_v50  ;;  %v4756_v54 = vcombine.low %v6110_v50, %v6110_v50  ;;  %v4757_v55 = vcombine.high %v6110_v50, %v6110_v50  ;;  %v313_v58 = vld [vmem:[%s6086_s23 + $0x20] sm:$0xff]  ;;  %v4762_v60 = vcombine.low %v2299_v51, %v2299_v51  ;;  %v5271_v9 = vld [vmem:[%s7565_s2 + $0x208] ss:$20 sps:$4 sm:$0xff]   ;;  %v5283_v17 = vld [vmem:[%s7565_s2 + $0x258] ss:$20 sps:$4 sm:$0xff]  }
  0x1b   : > { %v5263_v59 = vld [vmem:[%s7565_s2 + $0x464] ss:$20 sps:$4 sm:$0xff]   ;;  %v4763_v61 = vcombine.high %v2299_v51, %v2299_v51  ;;  %v4767_v1 = vcombine.high %v2301_v56, %v2301_v56  ;;  %v6126_v2 = vcombine.high %v310_v57, %v313_v58  ;;  %v5265_v3 = vld [vmem:[%s7565_s2 + $0x1e0] ss:$20 sps:$4 sm:$0xff]   ;;  %2325 = vst [vmem:[#allocation2 + $0x10] sm:$0xf0] %v4764_v62  ;;  %v4758_v4 = vcombine.low %v313_v58, %v313_v58 }
  0x1c   : > { %1892 = vmatpush1.bf16.msra.mxu0 %v5223_v22  ;;  %1913 = vmatprep.mubr.bf16.mxu0 %v6114_v53  ;;  %2293 = vst [vmem:[#allocation2] sm:$0xf] %v4756_v54  ;;  %2294 = vst [vmem:[#allocation2 + $0x8] sm:$0xf] %v4757_v55  ;;  %v4759_v5 = vcombine.high %v313_v58, %v313_v58  ;;  %v5266_v6 = vld [vmem:[%s7565_s2 + $0x460] ss:$20 sps:$4 sm:$0xff]   ;;  %v6179_v21 = vcombine.low %v6104_v48, %v6110_v50 }
  0x1d   : > { %1934 = vmatpush1.bf16.msra.mxu1 %v5224_v23  ;;  %1893 = vmatprep.subr.bf16.mxu0 %v5225_v24  ;;  %2323 = vst [vmem:[#allocation2] sm:$0xf0] %v4762_v60  ;;  %2324 = vst [vmem:[#allocation2 + $0x8] sm:$0xf0] %v4763_v61  ;;  %v5267_v7 = vld [vmem:[%s7565_s2 + $0x20c] ss:$20 sps:$4 sm:$0xff]   ;;  %v6181_v22 = vcombine.low %v310_v57, %v313_v58 }
  0x1e   : > { %1935 = vmatprep.subr.bf16.mxu1 %v5227_v25  ;;  %2326 = vst [vmem:[#allocation2 + $0x18] sm:$0xf0] %v4765_v63  ;;  %2327 = vst [vmem:[#allocation2 + $0x20] sm:$0xf0] %v4766_v0  ;;  %v5269_v8 = vld [vmem:[%s7565_s2 + $0x48c] ss:$20 sps:$4 sm:$0xff]   ;;  %1955 = vmatprep.mubr.bf16.mxu1 %v6126_v2 }
  0x1f   : > { %2328 = vst [vmem:[#allocation2 + $0x28] sm:$0xf0] %v4767_v1  ;;  %2295 = vst [vmem:[#allocation2 + $0x10] sm:$0xf] %v4758_v4  ;;  %v5272_v10 = vld [vmem:[%s7565_s2 + $0x488] ss:$20 sps:$4 sm:$0xff]  }
  0x20   : > { %1894 = vmatpush1.bf16.msra.mxu0 %v5229_v26  ;;  %2296 = vst [vmem:[#allocation2 + $0x18] sm:$0xf] %v4759_v5  ;;  %v5273_v11 = vld [vmem:[%s7565_s2 + $0x234] ss:$20 sps:$4 sm:$0xff]   ;;  %v5277_v13 = vld [vmem:[%s7565_s2 + $0x230] ss:$20 sps:$4 sm:$0xff]  }
  0x21   : > { %1936 = vmatpush1.bf16.msra.mxu1 %v5230_v27  ;;  %1895 = vmatprep.subr.bf16.mxu0 %v5231_v28  ;;  %v5275_v12 = vld [vmem:[%s7565_s2 + $0x4b4] ss:$20 sps:$4 sm:$0xff]   ;;  %v5278_v14 = vld [vmem:[%s7565_s2 + $0x4b0] ss:$20 sps:$4 sm:$0xff]   ;;  %v5284_v18 = vld [vmem:[%s7565_s2 + $0x4d8] ss:$20 sps:$4 sm:$0xff]  }
  0x22   : > { %1937 = vmatprep.subr.bf16.mxu1 %v5233_v29  ;;  %v5279_v15 = vld [vmem:[%s7565_s2 + $0x25c] ss:$20 sps:$4 sm:$0xff]   ;;  %v5301_v19 = vld [vmem:[%s7565_s2 + $0x504] ss:$20 sps:$4 sm:$0xff]   ;;  %v5304_v20 = vld [vmem:[%s7565_s2 + $0xc] ss:$20 sps:$4 sm:$0xff]  }
  0x23   : > { %v5281_v16 = vld [vmem:[%s7565_s2 + $0x4dc] ss:$20 sps:$4 sm:$0xff]   ;;  %v5299_v23 = vld [vmem:[%s7565_s2 + $0x500] ss:$20 sps:$4 sm:$0xff]   ;;  %v5338_v48 = vld [vmem:[%s7565_s2 + $0xf8] ss:$20 sps:$4 sm:$0xff]  }
  0x24   : > { %1896 = vmatpush1.bf16.msra.mxu0 %v5235_v30  ;;  %v5302_v24 = vld [vmem:[%s7565_s2 + $0x8] ss:$20 sps:$4 sm:$0xff]   ;;  %v5307_v25 = vld [vmem:[%s7565_s2 + $0x52c] ss:$20 sps:$4 sm:$0xff]   ;;  %v5308_v28 = vld [vmem:[%s7565_s2 + $0x30] ss:$20 sps:$4 sm:$0xff]  }
  0x25   : > { %1938 = vmatpush1.bf16.msra.mxu1 %v5236_v31  ;;  %1897 = vmatprep.subr.bf16.mxu0 %v5237_v32  ;;  %v5310_v26 = vld [vmem:[%s7565_s2 + $0x34] ss:$20 sps:$4 sm:$0xff]   ;;  %v5316_v30 = vld [vmem:[%s7565_s2 + $0x5c] ss:$20 sps:$4 sm:$0xff]   ;;  %v5314_v32 = vld [vmem:[%s7565_s2 + $0x58] ss:$20 sps:$4 sm:$0xff]  }
  0x26   : > { %1939 = vmatprep.subr.bf16.mxu1 %v5239_v33  ;;  %v5305_v27 = vld [vmem:[%s7565_s2 + $0x528] ss:$20 sps:$4 sm:$0xff]   ;;  %v5311_v31 = vld [vmem:[%s7565_s2 + $0x550] ss:$20 sps:$4 sm:$0xff]   ;;  %v5341_v57 = vld [vmem:[%s7565_s2 + $0x618] ss:$20 sps:$4 sm:$0xff]  }
  0x27   : > { %v5313_v29 = vld [vmem:[%s7565_s2 + $0x554] ss:$20 sps:$4 sm:$0xff]   ;;  %v5319_v33 = vld [vmem:[%s7565_s2 + $0x57c] ss:$20 sps:$4 sm:$0xff]   ;;  %v5346_v52 = vld [vmem:[%s7565_s2 + $0x124] ss:$20 sps:$4 sm:$0xff]  }
  0x28   : > { %1898 = vmatpush1.bf16.msra.mxu0 %v5241_v34  ;;  %v5322_v34 = vld [vmem:[%s7565_s2 + $0x84] ss:$20 sps:$4 sm:$0xff]   ;;  %v6268_v50 = vld [vmem:[%s6086_s23 + $0x28] sm:$0xff]  ;;  %v5343_v51 = vld [vmem:[%s7565_s2 + $0x61c] ss:$20 sps:$4 sm:$0xff]  }
  0x29   : > { %1940 = vmatpush1.bf16.msra.mxu1 %v5242_v35  ;;  %1899 = vmatprep.subr.bf16.mxu0 %v5243_v36  ;;  %v5317_v35 = vld [vmem:[%s7565_s2 + $0x578] ss:$20 sps:$4 sm:$0xff]   ;;  %v5320_v36 = vld [vmem:[%s7565_s2 + $0x80] ss:$20 sps:$4 sm:$0xff]   ;;  %v4760_v55 = vcombine.low %v6268_v50, %v6268_v50  ;;  %v4761_v56 = vcombine.high %v6268_v50, %v6268_v50  ;;  %v5350_v62 = vld [vmem:[%s7565_s2 + $0x148] ss:$20 sps:$4 sm:$0xff]  }
  0x2a   : > { %1941 = vmatprep.subr.bf16.mxu1 %v5245_v37  ;;  %v5325_v37 = vld [vmem:[%s7565_s2 + $0x5a4] ss:$20 sps:$4 sm:$0xff]   ;;  %v5344_v58 = vld [vmem:[%s7565_s2 + $0x120] ss:$20 sps:$4 sm:$0xff]   ;;  %v5353_v1 = vld [vmem:[%s7565_s2 + $0x668] ss:$20 sps:$4 sm:$0xff]  }
  0x2b   : > { %2297 = vst [vmem:[#allocation2 + $0x20] sm:$0xf] %v4760_v55  ;;  %2298 = vst [vmem:[#allocation2 + $0x28] sm:$0xf] %v4761_v56  ;;  %v5352_v60 = vld [vmem:[%s7565_s2 + $0x14c] ss:$20 sps:$4 sm:$0xff]  }
  0x2c   : > { %1900 = vmatpush1.bf16.msra.mxu0 %v5247_v38  ;;  %v5328_v38 = vld [vmem:[%s7565_s2 + $0xac] ss:$20 sps:$4 sm:$0xff]   ;;  %v5358_v0 = vld [vmem:[%s7565_s2 + $0x174] ss:$20 sps:$4 sm:$0xff]   ;;  %v5364_v5 = vld [vmem:[%s7565_s2 + $0x19c] ss:$20 sps:$4 sm:$0xff]  }
  0x2d   : > { %1942 = vmatpush1.bf16.msra.mxu1 %v5248_v39  ;;  %1901 = vmatprep.subr.bf16.mxu0 %v5249_v40  ;;  %v5323_v39 = vld [vmem:[%s7565_s2 + $0x5a0] ss:$20 sps:$4 sm:$0xff]   ;;  %v5326_v40 = vld [vmem:[%s7565_s2 + $0xa8] ss:$20 sps:$4 sm:$0xff]   ;;  %v5428_v55 = vld [vmem:[%s7565_s2 + $0xd8] ss:$20 sps:$4 sm:$0xff]  }
  0x2e   : > { %1943 = vmatprep.subr.bf16.mxu1 %v5251_v41  ;;  %v5331_v41 = vld [vmem:[%s7565_s2 + $0x5cc] ss:$20 sps:$4 sm:$0xff]   ;;  %v5361_v4 = vld [vmem:[%s7565_s2 + $0x694] ss:$20 sps:$4 sm:$0xff]   ;;  %v5431_v56 = vld [vmem:[%s7565_s2 + $0x37c] ss:$20 sps:$4 sm:$0xff]  }
  0x2f   : > { %v5347_v61 = vld [vmem:[%s7565_s2 + $0x640] ss:$20 sps:$4 sm:$0xff]  }
  0x30   : > { %1902 = vmatpush1.bf16.msra.mxu0 %v5253_v42  ;;  %v5334_v42 = vld [vmem:[%s7565_s2 + $0xd4] ss:$20 sps:$4 sm:$0xff]   ;;  %v5355_v63 = vld [vmem:[%s7565_s2 + $0x66c] ss:$20 sps:$4 sm:$0xff]  }
  0x31   : > { %1944 = vmatpush1.bf16.msra.mxu1 %v5254_v43  ;;  %1903 = vmatprep.subr.bf16.mxu0 %v5255_v44  ;;  %v5329_v43 = vld [vmem:[%s7565_s2 + $0x5c8] ss:$20 sps:$4 sm:$0xff]   ;;  %v5332_v44 = vld [vmem:[%s7565_s2 + $0xd0] ss:$20 sps:$4 sm:$0xff]  }
  0x32   : > { %1945 = vmatprep.subr.bf16.mxu1 %v5257_v45  ;;  %v5337_v45 = vld [vmem:[%s7565_s2 + $0x5f4] ss:$20 sps:$4 sm:$0xff]  }
  0x34   : > { %1904 = vmatpush1.bf16.msra.mxu0 %v5259_v46  ;;  %v5340_v46 = vld [vmem:[%s7565_s2 + $0xfc] ss:$20 sps:$4 sm:$0xff]  }
  0x35   : > { %1946 = vmatpush1.bf16.msra.mxu1 %v5260_v47  ;;  %1905 = vmatprep.subr.bf16.mxu0 %v5261_v49  ;;  %v5335_v47 = vld [vmem:[%s7565_s2 + $0x5f0] ss:$20 sps:$4 sm:$0xff]  }
  0x36   : > { %1947 = vmatprep.subr.bf16.mxu1 %v5263_v59  ;;  %v6265_v49 = vld [vmem:[%s6086_s23 + $0x10] sm:$0xff]  ;;  %v5349_v59 = vld [vmem:[%s7565_s2 + $0x644] ss:$20 sps:$4 sm:$0xff]  }
  0x37   : > { %v6278_v54 = vcombine.high %v6265_v49, %v6268_v50 }
  0x38   : > { %1906 = vmatpush1.bf16.msra.mxu0 %v5265_v3  ;;  %v5356_v3 = vld [vmem:[%s7565_s2 + $0x170] ss:$20 sps:$4 sm:$0xff]  }
  0x39   : > { %1948 = vmatpush1.bf16.msra.mxu1 %v5266_v6  ;;  %1907 = vmatprep.subr.bf16.mxu0 %v5267_v7  ;;  %v5359_v6 = vld [vmem:[%s7565_s2 + $0x690] ss:$20 sps:$4 sm:$0xff]   ;;  %v5362_v7 = vld [vmem:[%s7565_s2 + $0x198] ss:$20 sps:$4 sm:$0xff]  }
  0x3a   : > { %1949 = vmatprep.subr.bf16.mxu1 %v5269_v8  ;;  %v5367_v8 = vld [vmem:[%s7565_s2 + $0x6bc] ss:$20 sps:$4 sm:$0xff]  }
  0x3c   : > { %1908 = vmatpush1.bf16.msra.mxu0 %v5271_v9  ;;  %v5370_v9 = vld [vmem:[%s7565_s2 + $0x1c4] ss:$20 sps:$4 sm:$0xff]  }
  0x3d   : > { %1950 = vmatpush1.bf16.msra.mxu1 %v5272_v10  ;;  %1909 = vmatprep.subr.bf16.mxu0 %v5273_v11  ;;  %v5365_v10 = vld [vmem:[%s7565_s2 + $0x6b8] ss:$20 sps:$4 sm:$0xff]   ;;  %v5368_v11 = vld [vmem:[%s7565_s2 + $0x1c0] ss:$20 sps:$4 sm:$0xff]  }
  0x3e   : > { %1951 = vmatprep.subr.bf16.mxu1 %v5275_v12  ;;  %v5373_v12 = vld [vmem:[%s7565_s2 + $0x6e4] ss:$20 sps:$4 sm:$0xff]  }
  0x40   : > { %1910 = vmatpush1.bf16.msra.mxu0 %v5277_v13  ;;  %v5376_v13 = vld [vmem:[%s7565_s2 + $0x1ec] ss:$20 sps:$4 sm:$0xff]  }
  0x41   : > { %1952 = vmatpush1.bf16.msra.mxu1 %v5278_v14  ;;  %1911 = vmatprep.subr.bf16.mxu0 %v5279_v15  ;;  %v5371_v14 = vld [vmem:[%s7565_s2 + $0x6e0] ss:$20 sps:$4 sm:$0xff]   ;;  %v5374_v15 = vld [vmem:[%s7565_s2 + $0x1e8] ss:$20 sps:$4 sm:$0xff]  }
  0x42   : > { %1953 = vmatprep.subr.bf16.mxu1 %v5281_v16  ;;  %v5379_v16 = vld [vmem:[%s7565_s2 + $0x70c] ss:$20 sps:$4 sm:$0xff]  }
  0x44   : > { %1912 = vmatpush1.bf16.msra.mxu0 %v5283_v17  ;;  %v5382_v17 = vld [vmem:[%s7565_s2 + $0x214] ss:$20 sps:$4 sm:$0xff]  }
  0x45   : > { %1954 = vmatpush1.bf16.msra.mxu1 %v5284_v18  ;;  %1965 = vmatprep.subr.bf16.mxu0 %v5301_v19  ;;  %v5377_v18 = vld [vmem:[%s7565_s2 + $0x708] ss:$20 sps:$4 sm:$0xff]   ;;  %v5380_v19 = vld [vmem:[%s7565_s2 + $0x210] ss:$20 sps:$4 sm:$0xff]  }
  0x46   : > { %2007 = vmatprep.subr.bf16.mxu1 %v5304_v20  ;;  %v5385_v20 = vld [vmem:[%s7565_s2 + $0x734] ss:$20 sps:$4 sm:$0xff]  }
  0x47   : > { %1914 = vmatmul.mubr.bf16.vlgmr.msra.gmra.mrb[0].mxu0 %v6179_v21 }
  0x48   : > { %1956 = vmatmul.mubr.bf16.vlgmr.msra.gmra.mrb[0].mxu1 %v6181_v22  ;;  %1966 = vmatpush1.bf16.msra.mxu0 %v5299_v23  ;;  %v5388_v23 = vld [vmem:[%s7565_s2 + $0x23c] ss:$20 sps:$4 sm:$0xff]  }
  0x49   : > { %2008 = vmatpush1.bf16.msra.mxu1 %v5302_v24  ;;  %1967 = vmatprep.subr.bf16.mxu0 %v5307_v25  ;;  %v5383_v24 = vld [vmem:[%s7565_s2 + $0x730] ss:$20 sps:$4 sm:$0xff]   ;;  %v5386_v25 = vld [vmem:[%s7565_s2 + $0x238] ss:$20 sps:$4 sm:$0xff]  }
  0x4a   : > { %2009 = vmatprep.subr.bf16.mxu1 %v5310_v26  ;;  %2039 = vmatprep.mubr.bf16.mxu1 %v6114_v53  ;;  %v5391_v26 = vld [vmem:[%s7565_s2 + $0x75c] ss:$20 sps:$4 sm:$0xff]  }
  0x4b   : > { %1997 = vmatprep.mubr.bf16.mxu0 %v6278_v54 }
  0x4c   : > { %1968 = vmatpush1.bf16.msra.mxu0 %v5305_v27  ;;  %v5394_v27 = vld [vmem:[%s7565_s2 + $0x264] ss:$20 sps:$4 sm:$0xff]  }
  0x4d   : > { %2010 = vmatpush1.bf16.msra.mxu1 %v5308_v28  ;;  %1969 = vmatprep.subr.bf16.mxu0 %v5313_v29  ;;  %v5389_v28 = vld [vmem:[%s7565_s2 + $0x758] ss:$20 sps:$4 sm:$0xff]   ;;  %v5392_v29 = vld [vmem:[%s7565_s2 + $0x260] ss:$20 sps:$4 sm:$0xff]  }
  0x4e   : > { %2011 = vmatprep.subr.bf16.mxu1 %v5316_v30  ;;  %v5401_v30 = vld [vmem:[%s7565_s2 + $0x28c] ss:$20 sps:$4 sm:$0xff]  }
  0x50   : > { %1970 = vmatpush1.bf16.msra.mxu0 %v5311_v31  ;;  %v5402_v31 = vld [vmem:[%s7565_s2 + $0x150] ss:$20 sps:$4 sm:$0xff]  }
  0x51   : > { %2012 = vmatpush1.bf16.msra.mxu1 %v5314_v32  ;;  %1971 = vmatprep.subr.bf16.mxu0 %v5319_v33  ;;  %v6395_v32 = vcombine.low %v6265_v49, %v6268_v50  ;;  %v5399_v33 = vld [vmem:[%s7565_s2 + $0x288] ss:$20 sps:$4 sm:$0xff]   ;;  %v5423_v49 = vld [vmem:[%s7565_s2 + $0xb0] ss:$20 sps:$4 sm:$0xff]  }
  0x52   : > { %2013 = vmatprep.subr.bf16.mxu1 %v5322_v34  ;;  %v5403_v34 = vld [vmem:[%s7565_s2 + $0x10] ss:$20 sps:$4 sm:$0xff]   ;;  %v5426_v50 = vld [vmem:[%s7565_s2 + $0x354] ss:$20 sps:$4 sm:$0xff]  }
  0x54   : > { %1972 = vmatpush1.bf16.msra.mxu0 %v5317_v35  ;;  %v5406_v35 = vld [vmem:[%s7565_s2 + $0x2b4] ss:$20 sps:$4 sm:$0xff]  }
  0x55   : > { %2014 = vmatpush1.bf16.msra.mxu1 %v5320_v36  ;;  %1973 = vmatprep.subr.bf16.mxu0 %v5325_v37  ;;  %v5407_v36 = vld [vmem:[%s7565_s2 + $0x178] ss:$20 sps:$4 sm:$0xff]   ;;  %v5404_v37 = vld [vmem:[%s7565_s2 + $0x2b0] ss:$20 sps:$4 sm:$0xff]  }
  0x56   : > { %2015 = vmatprep.subr.bf16.mxu1 %v5328_v38  ;;  %v5408_v38 = vld [vmem:[%s7565_s2 + $0x38] ss:$20 sps:$4 sm:$0xff]  }
  0x58   : > { %1974 = vmatpush1.bf16.msra.mxu0 %v5323_v39  ;;  %v5411_v39 = vld [vmem:[%s7565_s2 + $0x2dc] ss:$20 sps:$4 sm:$0xff]  }
  0x59   : > { %2016 = vmatpush1.bf16.msra.mxu1 %v5326_v40  ;;  %1975 = vmatprep.subr.bf16.mxu0 %v5331_v41  ;;  %v5412_v40 = vld [vmem:[%s7565_s2 + $0x1a0] ss:$20 sps:$4 sm:$0xff]   ;;  %v5409_v41 = vld [vmem:[%s7565_s2 + $0x2d8] ss:$20 sps:$4 sm:$0xff]  }
  0x5a   : > { %2017 = vmatprep.subr.bf16.mxu1 %v5334_v42  ;;  %v5413_v42 = vld [vmem:[%s7565_s2 + $0x60] ss:$20 sps:$4 sm:$0xff]  }
  0x5c   : > { %1976 = vmatpush1.bf16.msra.mxu0 %v5329_v43  ;;  %v5416_v43 = vld [vmem:[%s7565_s2 + $0x304] ss:$20 sps:$4 sm:$0xff]  }
  0x5d   : > { %2018 = vmatpush1.bf16.msra.mxu1 %v5332_v44  ;;  %1977 = vmatprep.subr.bf16.mxu0 %v5337_v45  ;;  %v5417_v44 = vld [vmem:[%s7565_s2 + $0x1c8] ss:$20 sps:$4 sm:$0xff]  }
  0x5e   : > { %2019 = vmatprep.subr.bf16.mxu1 %v5340_v46  ;;  %v5418_v45 = vld [vmem:[%s7565_s2 + $0x88] ss:$20 sps:$4 sm:$0xff]   ;;  %v5421_v46 = vld [vmem:[%s7565_s2 + $0x32c] ss:$20 sps:$4 sm:$0xff]  }
  0x60   : > { %1978 = vmatpush1.bf16.msra.mxu0 %v5335_v47  ;;  %v5422_v47 = vld [vmem:[%s7565_s2 + $0x1f0] ss:$20 sps:$4 sm:$0xff]  }
  0x61   : > { %2020 = vmatpush1.bf16.msra.mxu1 %v5338_v48  ;;  %1979 = vmatprep.subr.bf16.mxu0 %v5343_v51  ;;  %v5419_v48 = vld [vmem:[%s7565_s2 + $0x328] ss:$20 sps:$4 sm:$0xff]   ;;  %v5427_v51 = vld [vmem:[%s7565_s2 + $0x218] ss:$20 sps:$4 sm:$0xff]  }
  0x62   : > { %2021 = vmatprep.subr.bf16.mxu1 %v5346_v52  ;;  %v5424_v52 = vld [vmem:[%s7565_s2 + $0x350] ss:$20 sps:$4 sm:$0xff]  }
  0x64   : > { %1980 = vmatpush1.bf16.msra.mxu0 %v5341_v57  ;;  %v5432_v57 = vld [vmem:[%s7565_s2 + $0x240] ss:$20 sps:$4 sm:$0xff]  }
  0x65   : > { %2022 = vmatpush1.bf16.msra.mxu1 %v5344_v58  ;;  %1981 = vmatprep.subr.bf16.mxu0 %v5349_v59  ;;  %v5429_v58 = vld [vmem:[%s7565_s2 + $0x378] ss:$20 sps:$4 sm:$0xff]   ;;  %v5433_v59 = vld [vmem:[%s7565_s2 + $0x100] ss:$20 sps:$4 sm:$0xff]  }
  0x66   : > { %2023 = vmatprep.subr.bf16.mxu1 %v5352_v60  ;;  %v5436_v60 = vld [vmem:[%s7565_s2 + $0x3a4] ss:$20 sps:$4 sm:$0xff]  }
  0x68   : > { %1982 = vmatpush1.bf16.msra.mxu0 %v5347_v61  ;;  %v5437_v61 = vld [vmem:[%s7565_s2 + $0x268] ss:$20 sps:$4 sm:$0xff]  }
  0x69   : > { %2024 = vmatpush1.bf16.msra.mxu1 %v5350_v62  ;;  %1983 = vmatprep.subr.bf16.mxu0 %v5355_v63  ;;  %v5434_v62 = vld [vmem:[%s7565_s2 + $0x3a0] ss:$20 sps:$4 sm:$0xff]   ;;  %v5438_v63 = vld [vmem:[%s7565_s2 + $0x128] ss:$20 sps:$4 sm:$0xff]  }
  0x6a   : > { %2025 = vmatprep.subr.bf16.mxu1 %v5358_v0  ;;  %v5441_v0 = vld [vmem:[%s7565_s2 + $0x3cc] ss:$20 sps:$4 sm:$0xff]  }
  0x6c   : > { %1984 = vmatpush1.bf16.msra.mxu0 %v5353_v1  ;;  %v5442_v1 = vld [vmem:[%s7565_s2 + $0x3d0] ss:$20 sps:$4 sm:$0xff]  }
  0x6d   : > { %2026 = vmatpush1.bf16.msra.mxu1 %v5356_v3  ;;  %1985 = vmatprep.subr.bf16.mxu0 %v5361_v4  ;;  %v5439_v3 = vld [vmem:[%s7565_s2 + $0x3c8] ss:$20 sps:$4 sm:$0xff]   ;;  %v5443_v4 = vld [vmem:[%s7565_s2 + $0x290] ss:$20 sps:$4 sm:$0xff]  }
  0x6e   : > { %2027 = vmatprep.subr.bf16.mxu1 %v5364_v5  ;;  %v5446_v5 = vld [vmem:[%s7565_s2 + $0x3f4] ss:$20 sps:$4 sm:$0xff]  }
  0x70   : > { %1986 = vmatpush1.bf16.msra.mxu0 %v5359_v6  ;;  %v5447_v6 = vld [vmem:[%s7565_s2 + $0x3f8] ss:$20 sps:$4 sm:$0xff]  }
  0x71   : > { %2028 = vmatpush1.bf16.msra.mxu1 %v5362_v7  ;;  %1987 = vmatprep.subr.bf16.mxu0 %v5367_v8  ;;  %v5444_v7 = vld [vmem:[%s7565_s2 + $0x3f0] ss:$20 sps:$4 sm:$0xff]   ;;  %v5448_v8 = vld [vmem:[%s7565_s2 + $0x2b8] ss:$20 sps:$4 sm:$0xff]  }
  0x72   : > { %2029 = vmatprep.subr.bf16.mxu1 %v5370_v9  ;;  %v5451_v9 = vld [vmem:[%s7565_s2 + $0x41c] ss:$20 sps:$4 sm:$0xff]  }
  0x74   : > { %1988 = vmatpush1.bf16.msra.mxu0 %v5365_v10  ;;  %v5452_v10 = vld [vmem:[%s7565_s2 + $0x420] ss:$20 sps:$4 sm:$0xff]  }
  0x75   : > { %2030 = vmatpush1.bf16.msra.mxu1 %v5368_v11  ;;  %1989 = vmatprep.subr.bf16.mxu0 %v5373_v12  ;;  %v5453_v11 = vld [vmem:[%s7565_s2 + $0x2e0] ss:$20 sps:$4 sm:$0xff]   ;;  %v5456_v12 = vld [vmem:[%s7565_s2 + $0x444] ss:$20 sps:$4 sm:$0xff]  }
  0x76   : > { %2031 = vmatprep.subr.bf16.mxu1 %v5376_v13  ;;  %v5454_v13 = vld [vmem:[%s7565_s2 + $0x440] ss:$20 sps:$4 sm:$0xff]  }
  0x78   : > { %1990 = vmatpush1.bf16.msra.mxu0 %v5371_v14  ;;  %v5458_v14 = vld [vmem:[%s7565_s2 + $0x308] ss:$20 sps:$4 sm:$0xff]  }
  0x79   : > { %2032 = vmatpush1.bf16.msra.mxu1 %v5374_v15  ;;  %1991 = vmatprep.subr.bf16.mxu0 %v5379_v16  ;;  %v5461_v15 = vld [vmem:[%s7565_s2 + $0x46c] ss:$20 sps:$4 sm:$0xff]   ;;  %v5462_v16 = vld [vmem:[%s7565_s2 + $0x470] ss:$20 sps:$4 sm:$0xff]  }
  0x7a   : > { %2033 = vmatprep.subr.bf16.mxu1 %v5382_v17  ;;  %v5459_v17 = vld [vmem:[%s7565_s2 + $0x468] ss:$20 sps:$4 sm:$0xff]  }
  0x7c   : > { %1992 = vmatpush1.bf16.msra.mxu0 %v5377_v18  ;;  %v5463_v18 = vld [vmem:[%s7565_s2 + $0x330] ss:$20 sps:$4 sm:$0xff]  }
  0x7d   : > { %2034 = vmatpush1.bf16.msra.mxu1 %v5380_v19  ;;  %1993 = vmatprep.subr.bf16.mxu0 %v5385_v20  ;;  %v5466_v19 = vld [vmem:[%s7565_s2 + $0x494] ss:$20 sps:$4 sm:$0xff]   ;;  %v5467_v20 = vld [vmem:[%s7565_s2 + $0x498] ss:$20 sps:$4 sm:$0xff]  }
  0x7e   : > { %2035 = vmatprep.subr.bf16.mxu1 %v5388_v23  ;;  %v5464_v23 = vld [vmem:[%s7565_s2 + $0x490] ss:$20 sps:$4 sm:$0xff]  }
  0x80   : > { %1994 = vmatpush1.bf16.msra.mxu0 %v5383_v24  ;;  %v5468_v24 = vld [vmem:[%s7565_s2 + $0x358] ss:$20 sps:$4 sm:$0xff]  }
  0x81   : > { %2036 = vmatpush1.bf16.msra.mxu1 %v5386_v25  ;;  %1995 = vmatprep.subr.bf16.mxu0 %v5391_v26  ;;  %v5471_v25 = vld [vmem:[%s7565_s2 + $0x4bc] ss:$20 sps:$4 sm:$0xff]   ;;  %v5472_v26 = vld [vmem:[%s7565_s2 + $0x4c0] ss:$20 sps:$4 sm:$0xff]  }
  0x82   : > { %2037 = vmatprep.subr.bf16.mxu1 %v5394_v27  ;;  %v5469_v27 = vld [vmem:[%s7565_s2 + $0x4b8] ss:$20 sps:$4 sm:$0xff]  }
  0x84   : > { %1996 = vmatpush1.bf16.msra.mxu0 %v5389_v28  ;;  %v5473_v28 = vld [vmem:[%s7565_s2 + $0x380] ss:$20 sps:$4 sm:$0xff]  }
  0x85   : > { %2038 = vmatpush1.bf16.msra.mxu1 %v5392_v29  ;;  %5013 = vmatprep.subr.bf16.mxu0 %v5402_v31  ;;  %v5476_v29 = vld [vmem:[%s7565_s2 + $0x4e4] ss:$20 sps:$4 sm:$0xff]   ;;  %v5474_v31 = vld [vmem:[%s7565_s2 + $0x4e0] ss:$20 sps:$4 sm:$0xff]  }
  0x86   : > { %2050 = vmatprep.subr.bf16.mxu1 %v5401_v30  ;;  %v5477_v30 = vld [vmem:[%s7565_s2 + $0x4e8] ss:$20 sps:$4 sm:$0xff]  }
  0x87   : > { %1998 = vmatmul.mubr.bf16.vlgmr.msra.gmra.mrb[4].mxu0 %v6395_v32 }
  0x88   : > { %2040 = vmatmul.mubr.bf16.vlgmr.msra.gmra.mrb[4].mxu1 %v6179_v21  ;;  %5014 = vmatpush3.bf16.msra.mxu0 %v5403_v34  ;;  %v5481_v34 = vld [vmem:[%s7565_s2 + $0x50c] ss:$20 sps:$4 sm:$0xff]  }
  0x89   : > { %2051 = vmatpush1.bf16.msra.mxu1 %v5399_v33  ;;  %5015 = vmatprep.subr.bf16.mxu0 %v5407_v36  ;;  %v5478_v33 = vld [vmem:[%s7565_s2 + $0x3a8] ss:$20 sps:$4 sm:$0xff]  }
  0x8a   : > { %2052 = vmatprep.subr.bf16.mxu1 %v5406_v35  ;;  %2168 = vmatprep.mubr.bf16.mxu0 %v6114_v53  ;;  %v5414_v53 = vld [vmem:[%s7565_s2 + $0x300] ss:$20 sps:$4 sm:$0xff]   ;;  %v5482_v35 = vld [vmem:[%s7565_s2 + $0x650] ss:$20 sps:$4 sm:$0xff]   ;;  %v5479_v36 = vld [vmem:[%s7565_s2 + $0x508] ss:$20 sps:$4 sm:$0xff]  }
  0x8b   : > { %2082 = vmatprep.mubr.bf16.mxu1 %v6126_v2 }
  0x8c   : > { %5016 = vmatpush3.bf16.msra.mxu0 %v5408_v38  ;;  %v5486_v38 = vld [vmem:[%s7565_s2 + $0x534] ss:$20 sps:$4 sm:$0xff]  }
  0x8d   : > { %2053 = vmatpush1.bf16.msra.mxu1 %v5404_v37  ;;  %5017 = vmatprep.subr.bf16.mxu0 %v5412_v40  ;;  %v5483_v37 = vld [vmem:[%s7565_s2 + $0x510] ss:$20 sps:$4 sm:$0xff]  }
  0x8e   : > { %2054 = vmatprep.subr.bf16.mxu1 %v5411_v39  ;;  %v5487_v39 = vld [vmem:[%s7565_s2 + $0x678] ss:$20 sps:$4 sm:$0xff]   ;;  %v5484_v40 = vld [vmem:[%s7565_s2 + $0x530] ss:$20 sps:$4 sm:$0xff]  }
  0x90   : > { %5018 = vmatpush3.bf16.msra.mxu0 %v5413_v42  ;;  %v5491_v42 = vld [vmem:[%s7565_s2 + $0x55c] ss:$20 sps:$4 sm:$0xff]  }
  0x91   : > { %2055 = vmatpush1.bf16.msra.mxu1 %v5409_v41  ;;  %5019 = vmatprep.subr.bf16.mxu0 %v5417_v44  ;;  %v5488_v41 = vld [vmem:[%s7565_s2 + $0x538] ss:$20 sps:$4 sm:$0xff]   ;;  %v5493_v44 = vld [vmem:[%s7565_s2 + $0x560] ss:$20 sps:$4 sm:$0xff]  }
  0x92   : > { %2056 = vmatprep.subr.bf16.mxu1 %v5416_v43  ;;  %v5489_v43 = vld [vmem:[%s7565_s2 + $0x558] ss:$20 sps:$4 sm:$0xff]  }
  0x94   : > { %5020 = vmatpush3.bf16.msra.mxu0 %v5418_v45  ;;  %v5494_v45 = vld [vmem:[%s7565_s2 + $0x580] ss:$20 sps:$4 sm:$0xff]  }
  0x95   : > { %2057 = vmatpush1.bf16.msra.mxu1 %v5414_v53  ;;  %5021 = vmatprep.subr.bf16.mxu0 %v5422_v47  ;;  %v5496_v53 = vld [vmem:[%s7565_s2 + $0x584] ss:$20 sps:$4 sm:$0xff]   ;;  %v5501_v47 = vld [vmem:[%s7565_s2 + $0x5ac] ss:$20 sps:$4 sm:$0xff]  }
  0x96   : > { %2058 = vmatprep.subr.bf16.mxu1 %v5421_v46  ;;  %v5498_v46 = vld [vmem:[%s7565_s2 + $0x588] ss:$20 sps:$4 sm:$0xff]  }
  0x98   : > { %5022 = vmatpush3.bf16.msra.mxu0 %v5423_v49  ;;  %v5499_v49 = vld [vmem:[%s7565_s2 + $0x5a8] ss:$20 sps:$4 sm:$0xff]  }
  0x99   : > { %2059 = vmatpush1.bf16.msra.mxu1 %v5419_v48  ;;  %5023 = vmatprep.subr.bf16.mxu0 %v5427_v51  ;;  %v5502_v48 = vld [vmem:[%s7565_s2 + $0x6f0] ss:$20 sps:$4 sm:$0xff]   ;;  %v5506_v51 = vld [vmem:[%s7565_s2 + $0x5d4] ss:$20 sps:$4 sm:$0xff]  }
  0x9a   : > { %2060 = vmatprep.subr.bf16.mxu1 %v5426_v50  ;;  %v5503_v50 = vld [vmem:[%s7565_s2 + $0x5b0] ss:$20 sps:$4 sm:$0xff]  }
  0x9c   : > { %5024 = vmatpush3.bf16.msra.mxu0 %v5428_v55  ;;  %v5504_v55 = vld [vmem:[%s7565_s2 + $0x5d0] ss:$20 sps:$4 sm:$0xff]  }
  0x9d   : > { %2061 = vmatpush1.bf16.msra.mxu1 %v5424_v52  ;;  %5025 = vmatprep.subr.bf16.mxu0 %v5432_v57  ;;  %v5507_v52 = vld [vmem:[%s7565_s2 + $0x718] ss:$20 sps:$4 sm:$0xff]   ;;  %v5511_v57 = vld [vmem:[%s7565_s2 + $0x5fc] ss:$20 sps:$4 sm:$0xff]  }
  0x9e   : > { %2062 = vmatprep.subr.bf16.mxu1 %v5431_v56  ;;  %v5508_v56 = vld [vmem:[%s7565_s2 + $0x5d8] ss:$20 sps:$4 sm:$0xff]  }
  0xa0   : > { %5026 = vmatpush3.bf16.msra.mxu0 %v5433_v59  ;;  %v5509_v59 = vld [vmem:[%s7565_s2 + $0x5f8] ss:$20 sps:$4 sm:$0xff]  }
  0xa1   : > { %2063 = vmatpush1.bf16.msra.mxu1 %v5429_v58  ;;  %5027 = vmatprep.subr.bf16.mxu0 %v5437_v61  ;;  %v5512_v58 = vld [vmem:[%s7565_s2 + $0x740] ss:$20 sps:$4 sm:$0xff]   ;;  %v5516_v61 = vld [vmem:[%s7565_s2 + $0x624] ss:$20 sps:$4 sm:$0xff]  }
  0xa2   : > { %2064 = vmatprep.subr.bf16.mxu1 %v5436_v60  ;;  %v5513_v60 = vld [vmem:[%s7565_s2 + $0x600] ss:$20 sps:$4 sm:$0xff]  }
  0xa4   : > { %5028 = vmatpush3.bf16.msra.mxu0 %v5438_v63  ;;  %v5514_v63 = vld [vmem:[%s7565_s2 + $0x620] ss:$20 sps:$4 sm:$0xff]  }
  0xa5   : > { %2065 = vmatpush1.bf16.msra.mxu1 %v5434_v62  ;;  %5035 = vmatprep.subr.bf16.mxu0 %v5442_v1  ;;  %v5517_v62 = vld [vmem:[%s7565_s2 + $0x768] ss:$20 sps:$4 sm:$0xff]   ;;  %v5521_v1 = vld [vmem:[%s7565_s2 + $0x64c] ss:$20 sps:$4 sm:$0xff]  }
  0xa6   : > { %2066 = vmatprep.subr.bf16.mxu1 %v5441_v0  ;;  %v5518_v0 = vld [vmem:[%s7565_s2 + $0x628] ss:$20 sps:$4 sm:$0xff]  }
  0xa7   : > { %2169 = vmatmul.mubr.bf16.vlgmr.msra.gmra.mrb[8].mxu0 %v6179_v21  ;;  %v5449_v21 = vld [vmem:[%s7565_s2 + $0x418] ss:$20 sps:$4 sm:$0xff]  }
  0xa8   : > { %5036 = vmatpush3.bf16.msra.mxu0 %v5443_v4  ;;  %2209 = vmatprep.mubr.bf16.mxu0 %v6126_v2  ;;  %v5457_v2 = vld [vmem:[%s7565_s2 + $0x448] ss:$20 sps:$4 sm:$0xff]  }
  0xa9   : > { %2067 = vmatpush1.bf16.msra.mxu1 %v5439_v3  ;;  %5037 = vmatprep.subr.bf16.mxu0 %v5447_v6  ;;  %v5524_v3 = vld [vmem:[%s7565_s2 + $0x4] ss:$20 sps:$4 sm:$0xff]   ;;  %v5519_v4 = vld [vmem:[%s7565_s2 + $0x648] ss:$20 sps:$4 sm:$0xff]  }
  0xaa   : > { %2068 = vmatprep.subr.bf16.mxu1 %v5446_v5  ;;  %v5522_v5 = vld [vmem:[%s7565_s2] ss:$20 sps:$4 sm:$0xff]  }
  0xab   : > { %v5527_v6 = vld [vmem:[%s7565_s2 + $0x674] ss:$20 sps:$4 sm:$0xff]  }
  0xac   : > { %5038 = vmatpush3.bf16.msra.mxu0 %v5448_v8  ;;  %v5525_v8 = vld [vmem:[%s7565_s2 + $0x670] ss:$20 sps:$4 sm:$0xff]  }
  0xad   : > { %2069 = vmatpush1.bf16.msra.mxu1 %v5444_v7  ;;  %5039 = vmatprep.subr.bf16.mxu0 %v5452_v10  ;;  %v5530_v7 = vld [vmem:[%s7565_s2 + $0x2c] ss:$20 sps:$4 sm:$0xff]   ;;  %v5528_v10 = vld [vmem:[%s7565_s2 + $0x28] ss:$20 sps:$4 sm:$0xff]  }
  0xae   : > { %2070 = vmatprep.subr.bf16.mxu1 %v5451_v9  ;;  %v6711_v9 = vld [vmem:[#allocation2 + $0x8] sm:$0xff] }
  0xb0   : > { %5040 = vmatpush3.bf16.msra.mxu0 %v5453_v11  ;;  %v5536_v11 = vld [vmem:[%s7565_s2 + $0x54] ss:$20 sps:$4 sm:$0xff]  }
  0xb1   : > { %2071 = vmatpush1.bf16.msra.mxu1 %v5449_v21  ;;  %5041 = vmatprep.subr.bf16.mxu0 %v5457_v2  ;;  %v5533_v21 = vld [vmem:[%s7565_s2 + $0x69c] ss:$20 sps:$4 sm:$0xff]  }
  0xb2   : > { %2072 = vmatprep.subr.bf16.mxu1 %v5456_v12  ;;  %v5531_v12 = vld [vmem:[%s7565_s2 + $0x698] ss:$20 sps:$4 sm:$0xff]   ;;  %v5534_v2 = vld [vmem:[%s7565_s2 + $0x50] ss:$20 sps:$4 sm:$0xff]  }
  0xb4   : > { %5042 = vmatpush3.bf16.msra.mxu0 %v5458_v14  ;;  %v5542_v14 = vld [vmem:[%s7565_s2 + $0x7c] ss:$20 sps:$4 sm:$0xff]  }
  0xb5   : > { %2073 = vmatpush1.bf16.msra.mxu1 %v5454_v13  ;;  %5043 = vmatprep.subr.bf16.mxu0 %v5462_v16  ;;  %v5539_v13 = vld [vmem:[%s7565_s2 + $0x6c4] ss:$20 sps:$4 sm:$0xff]  }
  0xb6   : > { %2074 = vmatprep.subr.bf16.mxu1 %v5461_v15  ;;  %v5537_v15 = vld [vmem:[%s7565_s2 + $0x6c0] ss:$20 sps:$4 sm:$0xff]   ;;  %v5540_v16 = vld [vmem:[%s7565_s2 + $0x78] ss:$20 sps:$4 sm:$0xff]  }
  0xb8   : > { %5044 = vmatpush3.bf16.msra.mxu0 %v5463_v18  ;;  %v5548_v18 = vld [vmem:[%s7565_s2 + $0xa4] ss:$20 sps:$4 sm:$0xff]  }
  0xb9   : > { %2075 = vmatpush1.bf16.msra.mxu1 %v5459_v17  ;;  %5045 = vmatprep.subr.bf16.mxu0 %v5467_v20  ;;  %v5545_v17 = vld [vmem:[%s7565_s2 + $0x6ec] ss:$20 sps:$4 sm:$0xff]  }
  0xba   : > { %2076 = vmatprep.subr.bf16.mxu1 %v5466_v19  ;;  %v5543_v19 = vld [vmem:[%s7565_s2 + $0x6e8] ss:$20 sps:$4 sm:$0xff]   ;;  %v5546_v20 = vld [vmem:[%s7565_s2 + $0xa0] ss:$20 sps:$4 sm:$0xff]  }
  0xbc   : > { %5046 = vmatpush3.bf16.msra.mxu0 %v5468_v24  ;;  %v5554_v24 = vld [vmem:[%s7565_s2 + $0xcc] ss:$20 sps:$4 sm:$0xff]  }
  0xbd   : > { %2077 = vmatpush1.bf16.msra.mxu1 %v5464_v23  ;;  %5047 = vmatprep.subr.bf16.mxu0 %v5472_v26  ;;  %v5551_v23 = vld [vmem:[%s7565_s2 + $0x714] ss:$20 sps:$4 sm:$0xff]  }
  0xbe   : > { %2078 = vmatprep.subr.bf16.mxu1 %v5471_v25  ;;  %v5549_v25 = vld [vmem:[%s7565_s2 + $0x710] ss:$20 sps:$4 sm:$0xff]   ;;  %v5552_v26 = vld [vmem:[%s7565_s2 + $0xc8] ss:$20 sps:$4 sm:$0xff]  }
  0xc0   : > { %5048 = vmatpush3.bf16.msra.mxu0 %v5473_v28  ;;  %v5560_v28 = vld [vmem:[%s7565_s2 + $0xf4] ss:$20 sps:$4 sm:$0xff]  }
  0xc1   : > { %2079 = vmatpush1.bf16.msra.mxu1 %v5469_v27  ;;  %5049 = vmatprep.subr.bf16.mxu0 %v5477_v30  ;;  %v5557_v27 = vld [vmem:[%s7565_s2 + $0x73c] ss:$20 sps:$4 sm:$0xff]  }
  0xc2   : > { %2080 = vmatprep.subr.bf16.mxu1 %v5476_v29  ;;  %v5555_v29 = vld [vmem:[%s7565_s2 + $0x738] ss:$20 sps:$4 sm:$0xff]   ;;  %v5558_v30 = vld [vmem:[%s7565_s2 + $0xf0] ss:$20 sps:$4 sm:$0xff]  }
  0xc4   : > { %5050 = vmatpush3.bf16.msra.mxu0 %v5478_v33  ;;  %v5566_v33 = vld [vmem:[%s7565_s2 + $0x11c] ss:$20 sps:$4 sm:$0xff]  }
  0xc5   : > { %2081 = vmatpush1.bf16.msra.mxu1 %v5474_v31  ;;  %5057 = vmatprep.subr.bf16.mxu0 %v5482_v35  ;;  %v5563_v31 = vld [vmem:[%s7565_s2 + $0x764] ss:$20 sps:$4 sm:$0xff]  }
  0xc6   : > { %2093 = vmatprep.subr.bf16.mxu1 %v5481_v34  ;;  %v5561_v34 = vld [vmem:[%s7565_s2 + $0x760] ss:$20 sps:$4 sm:$0xff]   ;;  %v5564_v35 = vld [vmem:[%s7565_s2 + $0x118] ss:$20 sps:$4 sm:$0xff]  }
  0xc7   : > { %2210 = vmatmul.mubr.bf16.vlgmr.msra.gmra.mrb[12].mxu0 %v6181_v22 }
  0xc8   : > { %2083 = vmatmul.mubr.bf16.vlgmr.msra.gmra.mrb[4].mxu1 %v6181_v22  ;;  %5058 = vmatpush3.bf16.msra.mxu0 %v5483_v37  ;;  %v5492_v22 = vld [vmem:[%s7565_s2 + $0x6a0] ss:$20 sps:$4 sm:$0xff]   ;;  %v5572_v37 = vld [vmem:[%s7565_s2 + $0x284] ss:$20 sps:$4 sm:$0xff]  }
  0xc9   : > { %2094 = vmatpush1.bf16.msra.mxu1 %v5479_v36  ;;  %5059 = vmatprep.subr.bf16.mxu0 %v5487_v39  ;;  %v5569_v36 = vld [vmem:[%s7565_s2 + $0x144] ss:$20 sps:$4 sm:$0xff]   ;;  %v5570_v39 = vld [vmem:[%s7565_s2 + $0x280] ss:$20 sps:$4 sm:$0xff]  }
  0xca   : > { %2095 = vmatprep.subr.bf16.mxu1 %v5486_v38  ;;  %2250 = vmatprep.mubr.bf16.mxu0 %v6278_v54  ;;  %v5567_v38 = vld [vmem:[%s7565_s2 + $0x140] ss:$20 sps:$4 sm:$0xff]  }
  0xcb   : > { %2125 = vmatprep.mubr.bf16.mxu1 %v6278_v54  ;;  %v5497_v54 = vld [vmem:[%s7565_s2 + $0x6c8] ss:$20 sps:$4 sm:$0xff]  }
  0xcc   : > { %5060 = vmatpush3.bf16.msra.mxu0 %v5488_v41  ;;  %v5578_v41 = vld [vmem:[%s7565_s2 + $0x2ac] ss:$20 sps:$4 sm:$0xff]  }
  0xcd   : > { %2096 = vmatpush1.bf16.msra.mxu1 %v5484_v40  ;;  %5061 = vmatprep.subr.bf16.mxu0 %v5492_v22  ;;  %v5575_v40 = vld [vmem:[%s7565_s2 + $0x16c] ss:$20 sps:$4 sm:$0xff]   ;;  %v5576_v22 = vld [vmem:[%s7565_s2 + $0x2a8] ss:$20 sps:$4 sm:$0xff]  }
  0xce   : > { %2097 = vmatprep.subr.bf16.mxu1 %v5491_v42  ;;  %v5573_v42 = vld [vmem:[%s7565_s2 + $0x168] ss:$20 sps:$4 sm:$0xff]  }
  0xd0   : > { %5062 = vmatpush3.bf16.msra.mxu0 %v5493_v44  ;;  %v5581_v44 = vld [vmem:[%s7565_s2 + $0x194] ss:$20 sps:$4 sm:$0xff]  }
  0xd1   : > { %2098 = vmatpush1.bf16.msra.mxu1 %v5489_v43  ;;  %5063 = vmatprep.subr.bf16.mxu0 %v5497_v54  ;;  %v6814_v43 = vld [vmem:[#allocation2 + $0x18] sm:$0xff]  ;;  %v5582_v54 = vld [vmem:[%s7565_s2 + $0x2d0] ss:$20 sps:$4 sm:$0xff]  }
  0xd2   : > { %2099 = vmatprep.subr.bf16.mxu1 %v5496_v53  ;;  %v5584_v53 = vld [vmem:[%s7565_s2 + $0x2d4] ss:$20 sps:$4 sm:$0xff]  }
  0xd4   : > { %5064 = vmatpush3.bf16.msra.mxu0 %v5498_v46  ;;  %v5590_v46 = vld [vmem:[%s7565_s2 + $0x2fc] ss:$20 sps:$4 sm:$0xff]  }
  0xd5   : > { %2100 = vmatpush1.bf16.msra.mxu1 %v5494_v45  ;;  %5065 = vmatprep.subr.bf16.mxu0 %v5502_v48  ;;  %v5587_v45 = vld [vmem:[%s7565_s2 + $0x1bc] ss:$20 sps:$4 sm:$0xff]   ;;  %v5588_v48 = vld [vmem:[%s7565_s2 + $0x2f8] ss:$20 sps:$4 sm:$0xff]  }
  0xd6   : > { %2101 = vmatprep.subr.bf16.mxu1 %v5501_v47  ;;  %v5585_v47 = vld [vmem:[%s7565_s2 + $0x1b8] ss:$20 sps:$4 sm:$0xff]  }
  0xd8   : > { %5066 = vmatpush3.bf16.msra.mxu0 %v5503_v50  ;;  %v5596_v50 = vld [vmem:[%s7565_s2 + $0x324] ss:$20 sps:$4 sm:$0xff]  }
  0xd9   : > { %2102 = vmatpush1.bf16.msra.mxu1 %v5499_v49  ;;  %5067 = vmatprep.subr.bf16.mxu0 %v5507_v52  ;;  %v5593_v49 = vld [vmem:[%s7565_s2 + $0x1e4] ss:$20 sps:$4 sm:$0xff]   ;;  %v5594_v52 = vld [vmem:[%s7565_s2 + $0x320] ss:$20 sps:$4 sm:$0xff]  }
  0xda   : > { %2103 = vmatprep.subr.bf16.mxu1 %v5506_v51  ;;  %v5591_v51 = vld [vmem:[%s7565_s2 + $0x1e0] ss:$20 sps:$4 sm:$0xff]  }
  0xdc   : > { %5068 = vmatpush3.bf16.msra.mxu0 %v5508_v56  ;;  %v5602_v56 = vld [vmem:[%s7565_s2 + $0x34c] ss:$20 sps:$4 sm:$0xff]  }
  0xdd   : > { %2104 = vmatpush1.bf16.msra.mxu1 %v5504_v55  ;;  %5069 = vmatprep.subr.bf16.mxu0 %v5512_v58  ;;  %v5599_v55 = vld [vmem:[%s7565_s2 + $0x20c] ss:$20 sps:$4 sm:$0xff]   ;;  %v5600_v58 = vld [vmem:[%s7565_s2 + $0x348] ss:$20 sps:$4 sm:$0xff]  }
  0xde   : > { %2105 = vmatprep.subr.bf16.mxu1 %v5511_v57  ;;  %v5597_v57 = vld [vmem:[%s7565_s2 + $0x208] ss:$20 sps:$4 sm:$0xff]  }
  0xe0   : > { %5070 = vmatpush3.bf16.msra.mxu0 %v5513_v60  ;;  %v5608_v60 = vld [vmem:[%s7565_s2 + $0x374] ss:$20 sps:$4 sm:$0xff]  }
  0xe1   : > { %2106 = vmatpush1.bf16.msra.mxu1 %v5509_v59  ;;  %5071 = vmatprep.subr.bf16.mxu0 %v5517_v62  ;;  %v5605_v59 = vld [vmem:[%s7565_s2 + $0x234] ss:$20 sps:$4 sm:$0xff]  }
  0xe2   : > { %2107 = vmatprep.subr.bf16.mxu1 %v5516_v61 }
  0xe4   : > { %5072 = vmatpush3.bf16.msra.mxu0 %v5518_v0 }
  0xe5   : > { %2108 = vmatpush1.bf16.msra.mxu1 %v5514_v63  ;;  %3871 = vmatprep.subr.bf16.mxu0 %v5524_v3  ;;  %v5603_v63 = vld [vmem:[%s7565_s2 + $0x230] ss:$20 sps:$4 sm:$0xff]  }
  0xe6   : > { %2109 = vmatprep.subr.bf16.mxu1 %v5521_v1 }
  0xe7   : > { %2251 = vmatmul.mubr.bf16.vlgmr.msra.gmra.mrb[16].mxu0 %v6395_v32 }
  0xe8   : > { %3872 = vmatpush1.bf16.msra.mxu0 %v5522_v5  ;;  %3903 = vmatprep.mubr.bf16.mxu0 %v6711_v9 }
  0xe9   : > { %2110 = vmatpush1.bf16.msra.mxu1 %v5519_v4  ;;  %3873 = vmatprep.subr.bf16.mxu0 %v5530_v7  ;;  %v5606_v4 = vld [vmem:[%s7565_s2 + $0x370] ss:$20 sps:$4 sm:$0xff]  }
  0xea   : > { %2111 = vmatprep.subr.bf16.mxu1 %v5527_v6 }
  0xec   : > { %3874 = vmatpush1.bf16.msra.mxu0 %v5528_v10  ;;  %v5614_v10 = vld [vmem:[%s7565_s2 + $0x39c] ss:$20 sps:$4 sm:$0xff]  }
  0xed   : > { %2112 = vmatpush1.bf16.msra.mxu1 %v5525_v8  ;;  %3875 = vmatprep.subr.bf16.mxu0 %v5536_v11  ;;  %v5611_v8 = vld [vmem:[%s7565_s2 + $0x25c] ss:$20 sps:$4 sm:$0xff]  }
  0xee   : > { %2113 = vmatprep.subr.bf16.mxu1 %v5533_v21 }
  0xf0   : > { %3876 = vmatpush1.bf16.msra.mxu0 %v5534_v2  ;;  %v5609_v2 = vld [vmem:[%s7565_s2 + $0x258] ss:$20 sps:$4 sm:$0xff]  }
  0xf1   : > { %2114 = vmatpush1.bf16.msra.mxu1 %v5531_v12  ;;  %3877 = vmatprep.subr.bf16.mxu0 %v5542_v14  ;;  %v5617_v14 = vld [vmem:[%s7565_s2 + $0x3c4] ss:$20 sps:$4 sm:$0xff]  }
  0xf2   : > { %2115 = vmatprep.subr.bf16.mxu1 %v5539_v13  ;;  %v5612_v13 = vld [vmem:[%s7565_s2 + $0x398] ss:$20 sps:$4 sm:$0xff]  }
  0xf4   : > { %3878 = vmatpush1.bf16.msra.mxu0 %v5540_v16  ;;  %v5615_v16 = vld [vmem:[%s7565_s2 + $0x3c0] ss:$20 sps:$4 sm:$0xff]  }
  0xf5   : > { %2116 = vmatpush1.bf16.msra.mxu1 %v5537_v15  ;;  %3879 = vmatprep.subr.bf16.mxu0 %v5548_v18  ;;  %v5620_v15 = vld [vmem:[%s7565_s2 + $0x504] ss:$20 sps:$4 sm:$0xff]  }
  0xf6   : > { %2117 = vmatprep.subr.bf16.mxu1 %v5545_v17  ;;  %v5618_v17 = vld [vmem:[%s7565_s2 + $0x500] ss:$20 sps:$4 sm:$0xff]  }
  0xf7   : > { %v6907_v18 = vld [vmem:[#allocation2] sm:$0xff] }
  0xf8   : > { %3880 = vmatpush1.bf16.msra.mxu0 %v5546_v20  ;;  %v5626_v20 = vld [vmem:[%s7565_s2 + $0x52c] ss:$20 sps:$4 sm:$0xff]  }
  0xf9   : > { %2118 = vmatpush1.bf16.msra.mxu1 %v5543_v19  ;;  %3881 = vmatprep.subr.bf16.mxu0 %v5554_v24  ;;  %v5623_v19 = vld [vmem:[%s7565_s2 + $0x3ec] ss:$20 sps:$4 sm:$0xff]   ;;  %v5624_v24 = vld [vmem:[%s7565_s2 + $0x528] ss:$20 sps:$4 sm:$0xff]  }
  0xfa   : > { %2119 = vmatprep.subr.bf16.mxu1 %v5551_v23  ;;  %v5621_v23 = vld [vmem:[%s7565_s2 + $0x3e8] ss:$20 sps:$4 sm:$0xff]  }
  0xfc   : > { %3882 = vmatpush1.bf16.msra.mxu0 %v5552_v26  ;;  %v5629_v26 = vld [vmem:[%s7565_s2 + $0x414] ss:$20 sps:$4 sm:$0xff]  }
  0xfd   : > { %2120 = vmatpush1.bf16.msra.mxu1 %v5549_v25  ;;  %3883 = vmatprep.subr.bf16.mxu0 %v5560_v28  ;;  %v6922_v25 = vld [vmem:[#allocation2 + $0x28] sm:$0xff]  ;;  %v5627_v28 = vld [vmem:[%s7565_s2 + $0x410] ss:$20 sps:$4 sm:$0xff]  }
  0xfe   : > { %2121 = vmatprep.subr.bf16.mxu1 %v5557_v27  ;;  %v5632_v27 = vld [vmem:[%s7565_s2 + $0x554] ss:$20 sps:$4 sm:$0xff]  }
 0x100   : > { %3884 = vmatpush1.bf16.msra.mxu0 %v5558_v30  ;;  %v5635_v30 = vld [vmem:[%s7565_s2 + $0x43c] ss:$20 sps:$4 sm:$0xff]  }
 0x101   : > { %2122 = vmatpush1.bf16.msra.mxu1 %v5555_v29  ;;  %3885 = vmatprep.subr.bf16.mxu0 %v5566_v33  ;;  %v5630_v29 = vld [vmem:[%s7565_s2 + $0x550] ss:$20 sps:$4 sm:$0xff]   ;;  %v5633_v33 = vld [vmem:[%s7565_s2 + $0x438] ss:$20 sps:$4 sm:$0xff]  }
 0x102   : > { %2123 = vmatprep.subr.bf16.mxu1 %v5563_v31  ;;  %v5638_v31 = vld [vmem:[%s7565_s2 + $0x57c] ss:$20 sps:$4 sm:$0xff]  }
 0x104   : > { %3886 = vmatpush1.bf16.msra.mxu0 %v5564_v35  ;;  %v5641_v35 = vld [vmem:[%s7565_s2 + $0x464] ss:$20 sps:$4 sm:$0xff]  }
 0x105   : > { %2124 = vmatpush1.bf16.msra.mxu1 %v5561_v34  ;;  %3887 = vmatprep.subr.bf16.mxu0 %v5569_v36  ;;  %v5636_v34 = vld [vmem:[%s7565_s2 + $0x578] ss:$20 sps:$4 sm:$0xff]  }
 0x106   : > { %3913 = vmatprep.subr.bf16.mxu1 %v5572_v37  ;;  %v5644_v36 = vld [vmem:[%s7565_s2 + $0x5a4] ss:$20 sps:$4 sm:$0xff]   ;;  %v5639_v37 = vld [vmem:[%s7565_s2 + $0x460] ss:$20 sps:$4 sm:$0xff]  }
 0x108   : > { %2126 = vmatmul.mubr.bf16.vlgmr.msra.gmra.mrb[4].mxu1 %v6395_v32  ;;  %3888 = vmatpush1.bf16.msra.mxu0 %v5567_v38  ;;  %v5579_v32 = vld [vmem:[%s7565_s2 + $0x190] ss:$20 sps:$4 sm:$0xff]   ;;  %v5642_v38 = vld [vmem:[%s7565_s2 + $0x5a0] ss:$20 sps:$4 sm:$0xff]  }
 0x109   : > { %3914 = vmatpush1.bf16.msra.mxu1 %v5570_v39  ;;  %3889 = vmatprep.subr.bf16.mxu0 %v5575_v40  ;;  %v5647_v39 = vld [vmem:[%s7565_s2 + $0x48c] ss:$20 sps:$4 sm:$0xff]  }
 0x10a   : > { %3915 = vmatprep.subr.bf16.mxu1 %v5578_v41  ;;  %3945 = vmatprep.mubr.bf16.mxu1 %v6814_v43  ;;  %v5650_v40 = vld [vmem:[%s7565_s2 + $0x5cc] ss:$20 sps:$4 sm:$0xff]   ;;  %v5645_v41 = vld [vmem:[%s7565_s2 + $0x488] ss:$20 sps:$4 sm:$0xff]  }
 0x10c   : > { %3890 = vmatpush1.bf16.msra.mxu0 %v5573_v42  ;;  %v5648_v42 = vld [vmem:[%s7565_s2 + $0x5c8] ss:$20 sps:$4 sm:$0xff]  }
 0x10d   : > { %3916 = vmatpush1.bf16.msra.mxu1 %v5576_v22  ;;  %3891 = vmatprep.subr.bf16.mxu0 %v5581_v44  ;;  %v5653_v22 = vld [vmem:[%s7565_s2 + $0x4b4] ss:$20 sps:$4 sm:$0xff]  }
 0x10e   : > { %3917 = vmatprep.subr.bf16.mxu1 %v5584_v53  ;;  %v5656_v44 = vld [vmem:[%s7565_s2 + $0x5f4] ss:$20 sps:$4 sm:$0xff]   ;;  %v5651_v53 = vld [vmem:[%s7565_s2 + $0x4b0] ss:$20 sps:$4 sm:$0xff]  }
 0x110   : > { %3892 = vmatpush1.bf16.msra.mxu0 %v5579_v32  ;;  %v5654_v32 = vld [vmem:[%s7565_s2 + $0x5f0] ss:$20 sps:$4 sm:$0xff]  }
 0x111   : > { %3918 = vmatpush1.bf16.msra.mxu1 %v5582_v54  ;;  %3893 = vmatprep.subr.bf16.mxu0 %v5587_v45  ;;  %v5659_v54 = vld [vmem:[%s7565_s2 + $0x4dc] ss:$20 sps:$4 sm:$0xff]  }
 0x112   : > { %3919 = vmatprep.subr.bf16.mxu1 %v5590_v46  ;;  %v5662_v45 = vld [vmem:[%s7565_s2 + $0x61c] ss:$20 sps:$4 sm:$0xff]   ;;  %v5657_v46 = vld [vmem:[%s7565_s2 + $0x4d8] ss:$20 sps:$4 sm:$0xff]  }
 0x114   : > { %3894 = vmatpush1.bf16.msra.mxu0 %v5585_v47  ;;  %v5660_v47 = vld [vmem:[%s7565_s2 + $0x618] ss:$20 sps:$4 sm:$0xff]  }
 0x115   : > { %3920 = vmatpush1.bf16.msra.mxu1 %v5588_v48  ;;  %3895 = vmatprep.subr.bf16.mxu0 %v5593_v49  ;;  %v5665_v48 = vld [vmem:[%s7565_s2 + $0x644] ss:$20 sps:$4 sm:$0xff]   ;;  %v5668_v49 = vld [vmem:[%s7565_s2 + $0xc] ss:$20 sps:$4 sm:$0xff]  }
 0x116   : > { %3921 = vmatprep.subr.bf16.mxu1 %v5596_v50  ;;  %v7003_v50 = vld [vmem:[#allocation2 + $0x10] sm:$0xff] }
 0x118   : > { %3896 = vmatpush1.bf16.msra.mxu0 %v5591_v51  ;;  %v5663_v51 = vld [vmem:[%s7565_s2 + $0x640] ss:$20 sps:$4 sm:$0xff]  }
 0x119   : > { %3922 = vmatpush1.bf16.msra.mxu1 %v5594_v52  ;;  %3897 = vmatprep.subr.bf16.mxu0 %v5599_v55  ;;  %v5666_v52 = vld [vmem:[%s7565_s2 + $0x8] ss:$20 sps:$4 sm:$0xff]   ;;  %v5671_v55 = vld [vmem:[%s7565_s2 + $0x66c] ss:$20 sps:$4 sm:$0xff]  }
 0x11a   : > { %3923 = vmatprep.subr.bf16.mxu1 %v5602_v56  ;;  %v1915_v61 = vpop.f32.mrb[0].mxu0  ;;  %v5674_v56 = vld [vmem:[%s7565_s2 + $0x34] ss:$20 sps:$4 sm:$0xff]  }
 0x11b   : > { %v1957_v62 = vpop.f32.mrb[0].mxu1  ;;  %v1917_v1 = vpop.f32.mrb[1].mxu0 }
 0x11c   : > { %v6874_v0 = vadd.f32 %v1957_v62, %v1915_v61  ;;  %v1959_v3 = vpop.f32.mrb[1].mxu1  ;;  %v1919_v6 = vpop.f32.mrb[2].mxu0  ;;  %3898 = vmatpush1.bf16.msra.mxu0 %v5597_v57  ;;  %v5669_v57 = vld [vmem:[%s7565_s2 + $0x668] ss:$20 sps:$4 sm:$0xff]   ;;  %v5675_v61 = vld [vmem:[%s7565_s2 + $0x690] ss:$20 sps:$4 sm:$0xff]  }
 0x11d   : > { %v6879_v5 = vadd.f32 %v1959_v3, %v1917_v1  ;;  %v1961_v7 = vpop.f32.mrb[2].mxu1  ;;  %3924 = vmatpush1.bf16.msra.mxu1 %v5600_v58  ;;  %v1920_v21 = vpop.f32.mrb[3].mxu0  ;;  %3899 = vmatprep.subr.bf16.mxu0 %v5605_v59  ;;  %v5672_v58 = vld [vmem:[%s7565_s2 + $0x30] ss:$20 sps:$4 sm:$0xff]   ;;  %v5677_v59 = vld [vmem:[%s7565_s2 + $0x694] ss:$20 sps:$4 sm:$0xff]  }
 0x11e   : > { %v1962_v11 = vpop.f32.mrb[3].mxu1  ;;  %3925 = vmatprep.subr.bf16.mxu1 %v5608_v60  ;;  %v5680_v60 = vld [vmem:[%s7565_s2 + $0x5c] ss:$20 sps:$4 sm:$0xff]   ;;  %v5678_v62 = vld [vmem:[%s7565_s2 + $0x58] ss:$20 sps:$4 sm:$0xff]  }
 0x11f   : > { %v6887_v12 = vadd.f32 %v1962_v11, %v1920_v21  ;;  %v5681_v1 = vld [vmem:[%s7565_s2 + $0x6b8] ss:$20 sps:$4 sm:$0xff]   ;;  %v5684_v3 = vld [vmem:[%s7565_s2 + $0x80] ss:$20 sps:$4 sm:$0xff]   ;;  %v2261_v11 = vlaneseq }
 0x120   : > { %3900 = vmatpush1.bf16.msra.mxu0 %v5603_v63  ;;  %v5683_v63 = vld [vmem:[%s7565_s2 + $0x6bc] ss:$20 sps:$4 sm:$0xff]   ;;  %v5692_v6 = vld [vmem:[%s7565_s2 + $0xac] ss:$20 sps:$4 sm:$0xff]   ;;  %v5698_v21 = vld [vmem:[%s7565_s2 + $0xd4] ss:$20 sps:$4 sm:$0xff]  }
 0x121   : > { %3926 = vmatpush1.bf16.msra.mxu1 %v5606_v4  ;;  %3901 = vmatprep.subr.bf16.mxu0 %v5611_v8  ;;  %v5689_v4 = vld [vmem:[%s7565_s2 + $0x6e4] ss:$20 sps:$4 sm:$0xff]   ;;  %v5687_v7 = vld [vmem:[%s7565_s2 + $0x6e0] ss:$20 sps:$4 sm:$0xff]   ;;  %v5690_v8 = vld [vmem:[%s7565_s2 + $0xa8] ss:$20 sps:$4 sm:$0xff]  }
 0x122   : > { %3927 = vmatprep.subr.bf16.mxu1 %v5614_v10  ;;  %v5695_v10 = vld [vmem:[%s7565_s2 + $0x70c] ss:$20 sps:$4 sm:$0xff]  }
 0x124   : > { %3902 = vmatpush1.bf16.msra.mxu0 %v5609_v2  ;;  %v5693_v2 = vld [vmem:[%s7565_s2 + $0x708] ss:$20 sps:$4 sm:$0xff]  }
 0x125   : > { %3928 = vmatpush1.bf16.msra.mxu1 %v5612_v13  ;;  %3955 = vmatprep.subr.bf16.mxu0 %v5620_v15  ;;  %v5696_v13 = vld [vmem:[%s7565_s2 + $0xd0] ss:$20 sps:$4 sm:$0xff]  }
 0x126   : > { %3929 = vmatprep.subr.bf16.mxu1 %v5617_v14  ;;  %v5701_v14 = vld [vmem:[%s7565_s2 + $0x734] ss:$20 sps:$4 sm:$0xff]   ;;  %v5704_v15 = vld [vmem:[%s7565_s2 + $0xfc] ss:$20 sps:$4 sm:$0xff]  }
 0x127   : > { %3904 = vmatmul.mubr.bf16.vlgmr.msra.gmra.mrb[20].mxu0 %v6907_v18 }
 0x128   : > { %3956 = vmatpush1.bf16.msra.mxu0 %v5618_v17  ;;  %3987 = vmatprep.mubr.bf16.mxu0 %v6922_v25 }
 0x129   : > { %3930 = vmatpush1.bf16.msra.mxu1 %v5615_v16  ;;  %3957 = vmatprep.subr.bf16.mxu0 %v5626_v20  ;;  %v7080_v20 = vshrl.u32 %v2261_v11, 7 }
 0x12a   : > { %3931 = vmatprep.subr.bf16.mxu1 %v5623_v19 }
 0x12b   : > { %vm2263_vm0 = vcmp.lt.s32.totalorder %v7080_v20, 7  ;;  %vm2278_vm1 = vcmp.lt.s32.totalorder %v7080_v20, 4  ;;  %vm2268_vm2 = vcmp.lt.s32.totalorder %v7080_v20, 6  ;;  %vm2273_vm3 = vcmp.lt.s32.totalorder %v7080_v20, 5 }
 0x12c   : > { %3958 = vmatpush1.bf16.msra.mxu0 %v5624_v24 }
 0x12d   : > { %3932 = vmatpush1.bf16.msra.mxu1 %v5621_v23  ;;  %3959 = vmatprep.subr.bf16.mxu0 %v5632_v27  ;;  %v5699_v23 = vld [vmem:[%s7565_s2 + $0x730] ss:$20 sps:$4 sm:$0xff]   ;;  %v5702_v27 = vld [vmem:[%s7565_s2 + $0xf8] ss:$20 sps:$4 sm:$0xff]  }
 0x12e   : > { %3933 = vmatprep.subr.bf16.mxu1 %v5629_v26 }
 0x130   : > { %3960 = vmatpush1.bf16.msra.mxu0 %v5630_v29  ;;  %v5710_v29 = vld [vmem:[%s7565_s2 + $0x124] ss:$20 sps:$4 sm:$0xff]  }
 0x131   : > { %3934 = vmatpush1.bf16.msra.mxu1 %v5627_v28  ;;  %3961 = vmatprep.subr.bf16.mxu0 %v5638_v31  ;;  %v5708_v31 = vld [vmem:[%s7565_s2 + $0x120] ss:$20 sps:$4 sm:$0xff]  }
 0x132   : > { %3935 = vmatprep.subr.bf16.mxu1 %v5635_v30  ;;  %v5705_v30 = vld [vmem:[%s7565_s2 + $0x758] ss:$20 sps:$4 sm:$0xff]  }
 0x134   : > { %3962 = vmatpush1.bf16.msra.mxu0 %v5636_v34 }
 0x135   : > { %3936 = vmatpush1.bf16.msra.mxu1 %v5633_v33  ;;  %3963 = vmatprep.subr.bf16.mxu0 %v5644_v36  ;;  %v5713_v33 = vld [vmem:[%s7565_s2 + $0x14c] ss:$20 sps:$4 sm:$0xff]  }
 0x136   : > { %3937 = vmatprep.subr.bf16.mxu1 %v5641_v35 }
 0x138   : > { %3964 = vmatpush1.bf16.msra.mxu0 %v5642_v38  ;;  %v5711_v38 = vld [vmem:[%s7565_s2 + $0x148] ss:$20 sps:$4 sm:$0xff]  }
 0x139   : > { %3938 = vmatpush1.bf16.msra.mxu1 %v5639_v37  ;;  %3965 = vmatprep.subr.bf16.mxu0 %v5650_v40  ;;  %v7111_v37 = vld [vmem:[#allocation2 + $0x20] sm:$0xff] }
 0x13a   : > { %3939 = vmatprep.subr.bf16.mxu1 %v5647_v39  ;;  %v5715_v40 = vld [vmem:[%s7565_s2 + $0x10] ss:$20 sps:$4 sm:$0xff]  }
 0x13c   : > { %3966 = vmatpush1.bf16.msra.mxu0 %v5648_v42  ;;  %v5719_v42 = vld [vmem:[%s7565_s2 + $0x178] ss:$20 sps:$4 sm:$0xff]  }
 0x13d   : > { %3940 = vmatpush1.bf16.msra.mxu1 %v5645_v41  ;;  %3967 = vmatprep.subr.bf16.mxu0 %v5656_v44  ;;  %v5718_v41 = vld [vmem:[%s7565_s2 + $0x174] ss:$20 sps:$4 sm:$0xff]   ;;  %v5720_v44 = vld [vmem:[%s7565_s2 + $0x38] ss:$20 sps:$4 sm:$0xff]  }
 0x13e   : > { %3941 = vmatprep.subr.bf16.mxu1 %v5653_v22  ;;  %v5716_v22 = vld [vmem:[%s7565_s2 + $0x170] ss:$20 sps:$4 sm:$0xff]  }
 0x140   : > { %3968 = vmatpush1.bf16.msra.mxu0 %v5654_v32  ;;  %v5724_v32 = vld [vmem:[%s7565_s2 + $0x1a0] ss:$20 sps:$4 sm:$0xff]  }
 0x141   : > { %3942 = vmatpush1.bf16.msra.mxu1 %v5651_v53  ;;  %3969 = vmatprep.subr.bf16.mxu0 %v5662_v45  ;;  %v5723_v53 = vld [vmem:[%s7565_s2 + $0x19c] ss:$20 sps:$4 sm:$0xff]   ;;  %v5721_v45 = vld [vmem:[%s7565_s2 + $0x198] ss:$20 sps:$4 sm:$0xff]  }
 0x142   : > { %3943 = vmatprep.subr.bf16.mxu1 %v5659_v54  ;;  %v5879_v54 = vld [vmem:[#allocation2 + $0x8] sm:$0xff] }
 0x144   : > { %3970 = vmatpush1.bf16.msra.mxu0 %v5660_v47  ;;  %v5728_v47 = vld [vmem:[%s7565_s2 + $0x1c4] ss:$20 sps:$4 sm:$0xff]  }
 0x145   : > { %3944 = vmatpush1.bf16.msra.mxu1 %v5657_v46  ;;  %3971 = vmatprep.subr.bf16.mxu0 %v5665_v48  ;;  %v5725_v46 = vld [vmem:[%s7565_s2 + $0x60] ss:$20 sps:$4 sm:$0xff]   ;;  %v5729_v48 = vld [vmem:[%s7565_s2 + $0x1c8] ss:$20 sps:$4 sm:$0xff]  }
 0x146   : > { %3997 = vmatprep.subr.bf16.mxu1 %v5668_v49  ;;  %v5726_v49 = vld [vmem:[%s7565_s2 + $0x1c0] ss:$20 sps:$4 sm:$0xff]  }
 0x148   : > { %3946 = vmatmul.mubr.bf16.vlgmr.msra.gmra.mrb[8].mxu1 %v7003_v50  ;;  %3972 = vmatpush1.bf16.msra.mxu0 %v5663_v51  ;;  %v5730_v51 = vld [vmem:[%s7565_s2 + $0x88] ss:$20 sps:$4 sm:$0xff]  }
 0x149   : > { %3998 = vmatpush1.bf16.msra.mxu1 %v5666_v52  ;;  %3973 = vmatprep.subr.bf16.mxu0 %v5671_v55  ;;  %v5733_v52 = vld [vmem:[%s7565_s2 + $0x1ec] ss:$20 sps:$4 sm:$0xff]   ;;  %v5734_v55 = vld [vmem:[%s7565_s2 + $0x1f0] ss:$20 sps:$4 sm:$0xff]  }
 0x14a   : > { %3999 = vmatprep.subr.bf16.mxu1 %v5674_v56  ;;  %4029 = vmatprep.mubr.bf16.mxu1 %v6711_v9  ;;  %v5686_v9 = vld [vmem:[%s7565_s2 + $0x84] ss:$20 sps:$4 sm:$0xff]   ;;  %v5731_v56 = vld [vmem:[%s7565_s2 + $0x1e8] ss:$20 sps:$4 sm:$0xff]  }
 0x14c   : > { %3974 = vmatpush1.bf16.msra.mxu0 %v5669_v57  ;;  %v5735_v57 = vld [vmem:[%s7565_s2 + $0xb0] ss:$20 sps:$4 sm:$0xff]  }
 0x14d   : > { %4000 = vmatpush1.bf16.msra.mxu1 %v5672_v58  ;;  %3975 = vmatprep.subr.bf16.mxu0 %v5677_v59  ;;  %v5738_v58 = vld [vmem:[%s7565_s2 + $0x214] ss:$20 sps:$4 sm:$0xff]   ;;  %v5739_v59 = vld [vmem:[%s7565_s2 + $0x218] ss:$20 sps:$4 sm:$0xff]  }
 0x14e   : > { %4001 = vmatprep.subr.bf16.mxu1 %v5680_v60  ;;  %v5736_v60 = vld [vmem:[%s7565_s2 + $0x210] ss:$20 sps:$4 sm:$0xff]  }
 0x150   : > { %3976 = vmatpush1.bf16.msra.mxu0 %v5675_v61  ;;  %v5740_v61 = vld [vmem:[%s7565_s2 + $0xd8] ss:$20 sps:$4 sm:$0xff]  }
 0x151   : > { %4002 = vmatpush1.bf16.msra.mxu1 %v5678_v62  ;;  %3977 = vmatprep.subr.bf16.mxu0 %v5683_v63  ;;  %v5743_v62 = vld [vmem:[%s7565_s2 + $0x23c] ss:$20 sps:$4 sm:$0xff]   ;;  %v5744_v63 = vld [vmem:[%s7565_s2 + $0x240] ss:$20 sps:$4 sm:$0xff]  }
 0x152   : > { %4003 = vmatprep.subr.bf16.mxu1 %v5686_v9 }
 0x154   : > { %3978 = vmatpush1.bf16.msra.mxu0 %v5681_v1 }
 0x155   : > { %4004 = vmatpush1.bf16.msra.mxu1 %v5684_v3  ;;  %3979 = vmatprep.subr.bf16.mxu0 %v5689_v4  ;;  %v5741_v3 = vld [vmem:[%s7565_s2 + $0x238] ss:$20 sps:$4 sm:$0xff]   ;;  %v5745_v4 = vld [vmem:[%s7565_s2 + $0x100] ss:$20 sps:$4 sm:$0xff]  }
 0x156   : > { %4005 = vmatprep.subr.bf16.mxu1 %v5692_v6 }
 0x158   : > { %3980 = vmatpush1.bf16.msra.mxu0 %v5687_v7 }
 0x159   : > { %4006 = vmatpush1.bf16.msra.mxu1 %v5690_v8  ;;  %3981 = vmatprep.subr.bf16.mxu0 %v5695_v10  ;;  %v5748_v8 = vld [vmem:[%s7565_s2 + $0x264] ss:$20 sps:$4 sm:$0xff]   ;;  %v5749_v10 = vld [vmem:[%s7565_s2 + $0x268] ss:$20 sps:$4 sm:$0xff]  }
 0x15a   : > { %4007 = vmatprep.subr.bf16.mxu1 %v5698_v21  ;;  %v1999_v16 = vpop.f32.mrb[4].mxu0 }
 0x15b   : > { %v2000_v17 = vadd.f32 %v1999_v16, %v6874_v0  ;;  %v2001_v19 = vpop.f32.mrb[5].mxu0  ;;  %v5707_v0 = vld [vmem:[%s7565_s2 + $0x75c] ss:$20 sps:$4 sm:$0xff]  }
 0x15c   : > { %v2002_v24 = vadd.f32 %v2001_v19, %v6879_v5  ;;  %v2003_v26 = vpop.f32.mrb[6].mxu0  ;;  %3982 = vmatpush1.bf16.msra.mxu0 %v5693_v2  ;;  %v5746_v2 = vld [vmem:[%s7565_s2 + $0x260] ss:$20 sps:$4 sm:$0xff]   ;;  %v5751_v16 = vld [vmem:[%s7565_s2 + $0x288] ss:$20 sps:$4 sm:$0xff]  }
 0x15d   : > { %4008 = vmatpush1.bf16.msra.mxu1 %v5696_v13  ;;  %v2004_v28 = vpop.f32.mrb[7].mxu0  ;;  %3983 = vmatprep.subr.bf16.mxu0 %v5701_v14  ;;  %v5750_v13 = vld [vmem:[%s7565_s2 + $0x128] ss:$20 sps:$4 sm:$0xff]   ;;  %v5753_v14 = vld [vmem:[%s7565_s2 + $0x28c] ss:$20 sps:$4 sm:$0xff]  }
 0x15e   : > { %4009 = vmatprep.subr.bf16.mxu1 %v5704_v15  ;;  %v2005_v5 = vadd.f32 %v2004_v28, %v6887_v12  ;;  %v2259_v34 = vrot.slane %v2002_v24, 1  ;;  %v5714_v12 = vld [vmem:[%s7565_s2 + $0x150] ss:$20 sps:$4 sm:$0xff]   ;;  %v5758_v19 = vld [vmem:[%s7565_s2 + $0x2b4] ss:$20 sps:$4 sm:$0xff]  }
 0x15f   : > { %v5754_v15 = vld [vmem:[%s7565_s2 + $0x3d0] ss:$20 sps:$4 sm:$0xff]   ;;  %v5760_v26 = vld [vmem:[%s7565_s2 + $0x2b8] ss:$20 sps:$4 sm:$0xff]   ;;  %v5765_v28 = vld [vmem:[%s7565_s2 + $0x2e0] ss:$20 sps:$4 sm:$0xff]  }
 0x160   : > { %v2260_v35 = vrot.slane %v2005_v5, 1  ;;  %3984 = vmatpush1.bf16.msra.mxu0 %v5699_v23  ;;  %v5759_v23 = vld [vmem:[%s7565_s2 + $0x3f8] ss:$20 sps:$4 sm:$0xff]   ;;  %v5756_v24 = vld [vmem:[%s7565_s2 + $0x2b0] ss:$20 sps:$4 sm:$0xff]  }
 0x161   : > { %4010 = vmatpush1.bf16.msra.mxu1 %v5702_v27  ;;  %3985 = vmatprep.subr.bf16.mxu0 %v5707_v0  ;;  %v5763_v27 = vld [vmem:[%s7565_s2 + $0x2dc] ss:$20 sps:$4 sm:$0xff]   ;;  %v5761_v0 = vld [vmem:[%s7565_s2 + $0x2d8] ss:$20 sps:$4 sm:$0xff]   ;;  %v5766_v5 = vld [vmem:[%s7565_s2 + $0x300] ss:$20 sps:$4 sm:$0xff]  }
 0x162   : > { %4011 = vmatprep.subr.bf16.mxu1 %v5710_v29  ;;  %v2264_v36 = vsel %vm2263_vm0, %v2259_v34, %v2260_v35  ;;  %v5768_v29 = vld [vmem:[%s7565_s2 + $0x304] ss:$20 sps:$4 sm:$0xff]   ;;  %v5771_v34 = vld [vmem:[%s7565_s2 + $0x328] ss:$20 sps:$4 sm:$0xff]  }
 0x163   : > { %v7116_v39 = vadd.f32 %v2264_v36, %v2000_v17  ;;  %v5755_v17 = vld [vmem:[%s7565_s2 + $0x290] ss:$20 sps:$4 sm:$0xff]   ;;  %v5779_v36 = vld [vmem:[%s7565_s2 + $0x498] ss:$20 sps:$4 sm:$0xff]  }
 0x164   : > { %3986 = vmatpush1.bf16.msra.mxu0 %v5705_v30  ;;  %v5770_v30 = vld [vmem:[%s7565_s2 + $0x308] ss:$20 sps:$4 sm:$0xff]   ;;  %v5775_v35 = vld [vmem:[%s7565_s2 + $0x330] ss:$20 sps:$4 sm:$0xff]  }
 0x165   : > { %4012 = vmatpush1.bf16.msra.mxu1 %v5708_v31  ;;  %5079 = vmatprep.subr.bf16.mxu0 %v5714_v12  ;;  %v5773_v31 = vld [vmem:[%s7565_s2 + $0x32c] ss:$20 sps:$4 sm:$0xff]   ;;  %v5778_v12 = vld [vmem:[%s7565_s2 + $0x354] ss:$20 sps:$4 sm:$0xff]  }
 0x166   : > { %4013 = vmatprep.subr.bf16.mxu1 %v5713_v33  ;;  %v5774_v33 = vld [vmem:[%s7565_s2 + $0x470] ss:$20 sps:$4 sm:$0xff]  }
 0x167   : > { %3988 = vmatmul.mubr.bf16.vlgmr.msra.gmra.mrb[24].mxu0 %v7111_v37 }
 0x168   : > { %5080 = vmatpush3.bf16.msra.mxu0 %v5715_v40  ;;  %4158 = vmatprep.mubr.bf16.mxu0 %v5879_v54  ;;  %v5780_v40 = vld [vmem:[%s7565_s2 + $0x358] ss:$20 sps:$4 sm:$0xff]  }
 0x169   : > { %4014 = vmatpush1.bf16.msra.mxu1 %v5711_v38  ;;  %5081 = vmatprep.subr.bf16.mxu0 %v5719_v42  ;;  %v5776_v38 = vld [vmem:[%s7565_s2 + $0x350] ss:$20 sps:$4 sm:$0xff]   ;;  %v5784_v42 = vld [vmem:[%s7565_s2 + $0x4c0] ss:$20 sps:$4 sm:$0xff]  }
 0x16a   : > { %4015 = vmatprep.subr.bf16.mxu1 %v5718_v41  ;;  %v5783_v41 = vld [vmem:[%s7565_s2 + $0x37c] ss:$20 sps:$4 sm:$0xff]  }
 0x16c   : > { %5082 = vmatpush3.bf16.msra.mxu0 %v5720_v44 }
 0x16d   : > { %4016 = vmatpush1.bf16.msra.mxu1 %v5716_v22  ;;  %5083 = vmatprep.subr.bf16.mxu0 %v5724_v32  ;;  %v5785_v32 = vld [vmem:[%s7565_s2 + $0x380] ss:$20 sps:$4 sm:$0xff]  }
 0x16e   : > { %4017 = vmatprep.subr.bf16.mxu1 %v5723_v53  ;;  %v5781_v53 = vld [vmem:[%s7565_s2 + $0x378] ss:$20 sps:$4 sm:$0xff]  }
 0x170   : > { %5084 = vmatpush3.bf16.msra.mxu0 %v5725_v46  ;;  %v5788_v46 = vld [vmem:[%s7565_s2 + $0x3a4] ss:$20 sps:$4 sm:$0xff]  }
 0x171   : > { %4018 = vmatpush1.bf16.msra.mxu1 %v5721_v45  ;;  %5085 = vmatprep.subr.bf16.mxu0 %v5729_v48 }
 0x172   : > { %4019 = vmatprep.subr.bf16.mxu1 %v5728_v47  ;;  %v5789_v47 = vld [vmem:[%s7565_s2 + $0x4e8] ss:$20 sps:$4 sm:$0xff]  }
 0x174   : > { %5086 = vmatpush3.bf16.msra.mxu0 %v5730_v51 }
 0x175   : > { %4020 = vmatpush1.bf16.msra.mxu1 %v5726_v49  ;;  %5087 = vmatprep.subr.bf16.mxu0 %v5734_v55  ;;  %v5790_v55 = vld [vmem:[%s7565_s2 + $0x3a8] ss:$20 sps:$4 sm:$0xff]  }
 0x176   : > { %4021 = vmatprep.subr.bf16.mxu1 %v5733_v52  ;;  %v5786_v52 = vld [vmem:[%s7565_s2 + $0x3a0] ss:$20 sps:$4 sm:$0xff]  }
 0x178   : > { %5088 = vmatpush3.bf16.msra.mxu0 %v5735_v57  ;;  %v5793_v57 = vld [vmem:[%s7565_s2 + $0x3cc] ss:$20 sps:$4 sm:$0xff]  }
 0x179   : > { %4022 = vmatpush1.bf16.msra.mxu1 %v5731_v56  ;;  %5089 = vmatprep.subr.bf16.mxu0 %v5739_v59  ;;  %v5791_v59 = vld [vmem:[%s7565_s2 + $0x3c8] ss:$20 sps:$4 sm:$0xff]  }
 0x17a   : > { %4023 = vmatprep.subr.bf16.mxu1 %v5738_v58  ;;  %v5029_v9 = vpop.f32.mrb[8].mxu0  ;;  %v5794_v58 = vld [vmem:[%s7565_s2 + $0x650] ss:$20 sps:$4 sm:$0xff]  }
 0x17b   : > { %v5030_v1 = vpop.f32.mrb[9].mxu0 }
 0x17c   : > { %5090 = vmatpush3.bf16.msra.mxu0 %v5740_v61  ;;  %v7194_v6 = vadd.f32 %v5030_v1, %v5029_v9  ;;  %v5032_v7 = vpop.f32.mrb[10].mxu0  ;;  %v5798_v61 = vld [vmem:[%s7565_s2 + $0x3f4] ss:$20 sps:$4 sm:$0xff]   ;;  %v5800_v9 = vld [vmem:[%s7565_s2 + $0x538] ss:$20 sps:$4 sm:$0xff]  }
 0x17d   : > { %4024 = vmatpush1.bf16.msra.mxu1 %v5736_v60  ;;  %5091 = vmatprep.subr.bf16.mxu0 %v5744_v63  ;;  %v5033_v21 = vpop.f32.mrb[11].mxu0  ;;  %v5795_v60 = vld [vmem:[%s7565_s2 + $0x510] ss:$20 sps:$4 sm:$0xff]  }
 0x17e   : > { %4025 = vmatprep.subr.bf16.mxu1 %v5743_v62  ;;  %v7202_v11 = vadd.f32 %v5033_v21, %v5032_v7  ;;  %v5799_v62 = vld [vmem:[%s7565_s2 + $0x678] ss:$20 sps:$4 sm:$0xff]   ;;  %v5796_v63 = vld [vmem:[%s7565_s2 + $0x3f0] ss:$20 sps:$4 sm:$0xff]   ;;  %v5810_v21 = vld [vmem:[%s7565_s2 + $0x588] ss:$20 sps:$4 sm:$0xff]  }
 0x17f   : > { %v5803_v1 = vld [vmem:[%s7565_s2 + $0x41c] ss:$20 sps:$4 sm:$0xff]   ;;  %v5808_v7 = vld [vmem:[%s7565_s2 + $0x444] ss:$20 sps:$4 sm:$0xff]  }
 0x180   : > { %5092 = vmatpush3.bf16.msra.mxu0 %v5745_v4  ;;  %v5801_v4 = vld [vmem:[%s7565_s2 + $0x418] ss:$20 sps:$4 sm:$0xff]  }
 0x181   : > { %4026 = vmatpush1.bf16.msra.mxu1 %v5741_v3  ;;  %5093 = vmatprep.subr.bf16.mxu0 %v5749_v10  ;;  %v5804_v3 = vld [vmem:[%s7565_s2 + $0x6a0] ss:$20 sps:$4 sm:$0xff]  }
 0x182   : > { %4027 = vmatprep.subr.bf16.mxu1 %v5748_v8  ;;  %v5809_v8 = vld [vmem:[%s7565_s2 + $0x6c8] ss:$20 sps:$4 sm:$0xff]   ;;  %v5806_v10 = vld [vmem:[%s7565_s2 + $0x440] ss:$20 sps:$4 sm:$0xff]  }
 0x184   : > { %5094 = vmatpush3.bf16.msra.mxu0 %v5750_v13  ;;  %v5811_v13 = vld [vmem:[%s7565_s2 + $0x468] ss:$20 sps:$4 sm:$0xff]  }
 0x185   : > { %4028 = vmatpush1.bf16.msra.mxu1 %v5746_v2  ;;  %5101 = vmatprep.subr.bf16.mxu0 %v5754_v15  ;;  %v5814_v2 = vld [vmem:[%s7565_s2 + $0x6f0] ss:$20 sps:$4 sm:$0xff]   ;;  %v5818_v15 = vld [vmem:[%s7565_s2 + $0x494] ss:$20 sps:$4 sm:$0xff]  }
 0x186   : > { %4040 = vmatprep.subr.bf16.mxu1 %v5753_v14  ;;  %v5815_v14 = vld [vmem:[%s7565_s2 + $0x5b0] ss:$20 sps:$4 sm:$0xff]  }
 0x187   : > { %4159 = vmatmul.mubr.bf16.vlgmr.msra.gmra.mrb[28].mxu0 %v6907_v18 }
 0x188   : > { %4030 = vmatmul.mubr.bf16.vlgmr.msra.gmra.mrb[12].mxu1 %v6907_v18  ;;  %5102 = vmatpush3.bf16.msra.mxu0 %v5755_v17  ;;  %v5764_v18 = vld [vmem:[%s7565_s2 + $0x420] ss:$20 sps:$4 sm:$0xff]   ;;  %v5816_v17 = vld [vmem:[%s7565_s2 + $0x490] ss:$20 sps:$4 sm:$0xff]  }
 0x189   : > { %4041 = vmatpush1.bf16.msra.mxu1 %v5751_v16  ;;  %5103 = vmatprep.subr.bf16.mxu0 %v5759_v23  ;;  %v5819_v16 = vld [vmem:[%s7565_s2 + $0x718] ss:$20 sps:$4 sm:$0xff]   ;;  %v5823_v23 = vld [vmem:[%s7565_s2 + $0x4bc] ss:$20 sps:$4 sm:$0xff]  }
 0x18a   : > { %4042 = vmatprep.subr.bf16.mxu1 %v5758_v19  ;;  %4199 = vmatprep.mubr.bf16.mxu0 %v6814_v43  ;;  %v5820_v19 = vld [vmem:[%s7565_s2 + $0x5d8] ss:$20 sps:$4 sm:$0xff]  }
 0x18b   : > { %4072 = vmatprep.mubr.bf16.mxu1 %v6814_v43  ;;  %v5769_v43 = vld [vmem:[%s7565_s2 + $0x448] ss:$20 sps:$4 sm:$0xff]  }
 0x18c   : > { %5104 = vmatpush3.bf16.msra.mxu0 %v5760_v26 }
 0x18d   : > { %4043 = vmatpush1.bf16.msra.mxu1 %v5756_v24  ;;  %5105 = vmatprep.subr.bf16.mxu0 %v5764_v18  ;;  %v5824_v24 = vld [vmem:[%s7565_s2 + $0x740] ss:$20 sps:$4 sm:$0xff]  }
 0x18e   : > { %4044 = vmatprep.subr.bf16.mxu1 %v5763_v27 }
 0x190   : > { %5106 = vmatpush3.bf16.msra.mxu0 %v5765_v28  ;;  %v5821_v28 = vld [vmem:[%s7565_s2 + $0x4b8] ss:$20 sps:$4 sm:$0xff]  }
 0x191   : > { %4045 = vmatpush1.bf16.msra.mxu1 %v5761_v0  ;;  %5107 = vmatprep.subr.bf16.mxu0 %v5769_v43 }
 0x192   : > { %4046 = vmatprep.subr.bf16.mxu1 %v5768_v29  ;;  %v5825_v29 = vld [vmem:[%s7565_s2 + $0x600] ss:$20 sps:$4 sm:$0xff]  }
 0x194   : > { %5108 = vmatpush3.bf16.msra.mxu0 %v5770_v30  ;;  %v5829_v30 = vld [vmem:[%s7565_s2 + $0x768] ss:$20 sps:$4 sm:$0xff]  }
 0x195   : > { %4047 = vmatpush1.bf16.msra.mxu1 %v5766_v5  ;;  %5109 = vmatprep.subr.bf16.mxu0 %v5774_v33  ;;  %v5828_v5 = vld [vmem:[%s7565_s2 + $0x4e4] ss:$20 sps:$4 sm:$0xff]  }
 0x196   : > { %4048 = vmatprep.subr.bf16.mxu1 %v5773_v31 }
 0x198   : > { %5110 = vmatpush3.bf16.msra.mxu0 %v5775_v35 }
 0x199   : > { %4049 = vmatpush1.bf16.msra.mxu1 %v5771_v34  ;;  %5111 = vmatprep.subr.bf16.mxu0 %v5779_v36  ;;  %v5830_v36 = vld [vmem:[%s7565_s2 + $0x628] ss:$20 sps:$4 sm:$0xff]  }
 0x19a   : > { %4050 = vmatprep.subr.bf16.mxu1 %v5778_v12  ;;  %v5051_v22 = vpop.f32.mrb[12].mxu0  ;;  %v5826_v12 = vld [vmem:[%s7565_s2 + $0x4e0] ss:$20 sps:$4 sm:$0xff]  }
 0x19b   : > { %v5052_v44 = vpop.f32.mrb[13].mxu0 }
 0x19c   : > { %5112 = vmatpush3.bf16.msra.mxu0 %v5780_v40  ;;  %v5053_v54 = vadd.f32 %v5052_v44, %v5051_v22  ;;  %v5054_v45 = vpop.f32.mrb[14].mxu0  ;;  %v5836_v22 = vld [vmem:[%s7565_s2 + $0x534] ss:$20 sps:$4 sm:$0xff]   ;;  %v5834_v44 = vld [vmem:[%s7565_s2 + $0x530] ss:$20 sps:$4 sm:$0xff]  }
 0x19d   : > { %4051 = vmatpush1.bf16.msra.mxu1 %v5776_v38  ;;  %5113 = vmatprep.subr.bf16.mxu0 %v5784_v42  ;;  %v5055_v48 = vpop.f32.mrb[15].mxu0  ;;  %v5833_v38 = vld [vmem:[%s7565_s2 + $0x50c] ss:$20 sps:$4 sm:$0xff]   ;;  %v5831_v42 = vld [vmem:[%s7565_s2 + $0x508] ss:$20 sps:$4 sm:$0xff]  }
 0x19e   : > { %4052 = vmatprep.subr.bf16.mxu1 %v5783_v41  ;;  %v7305_v49 = vadd.f32 %v5053_v54, %v7194_v6  ;;  %v5056_v51 = vadd.f32 %v5055_v48, %v5054_v45  ;;  %v5805_v6 = vld [vmem:[%s7565_s2 + $0x560] ss:$20 sps:$4 sm:$0xff]   ;;  %v5843_v45 = vld [vmem:[%s7565_s2 + $0x5a8] ss:$20 sps:$4 sm:$0xff]  }
 0x19f   : > { %v5845_v54 = vld [vmem:[%s7565_s2 + $0x5ac] ss:$20 sps:$4 sm:$0xff]   ;;  %v5851_v48 = vld [vmem:[%s7565_s2 + $0x5fc] ss:$20 sps:$4 sm:$0xff]  }
 0x1a0   : > { %5114 = vmatpush3.bf16.msra.mxu0 %v5785_v32  ;;  %v7314_v56 = vadd.f32 %v5056_v51, %v7202_v11  ;;  %v5813_v11 = vld [vmem:[%s7565_s2 + $0x46c] ss:$20 sps:$4 sm:$0xff]  }
 0x1a1   : > { %4053 = vmatpush1.bf16.msra.mxu1 %v5781_v53  ;;  %5115 = vmatprep.subr.bf16.mxu0 %v5789_v47  ;;  %v5839_v53 = vld [vmem:[%s7565_s2 + $0x55c] ss:$20 sps:$4 sm:$0xff]   ;;  %v5837_v32 = vld [vmem:[%s7565_s2 + $0x558] ss:$20 sps:$4 sm:$0xff]  }
 0x1a2   : > { %4054 = vmatprep.subr.bf16.mxu1 %v5788_v46  ;;  %v5848_v46 = vld [vmem:[%s7565_s2 + $0x5d4] ss:$20 sps:$4 sm:$0xff]   ;;  %v5846_v47 = vld [vmem:[%s7565_s2 + $0x5d0] ss:$20 sps:$4 sm:$0xff]  }
 0x1a4   : > { %5116 = vmatpush3.bf16.msra.mxu0 %v5790_v55  ;;  %v5849_v55 = vld [vmem:[%s7565_s2 + $0x5f8] ss:$20 sps:$4 sm:$0xff]  }
 0x1a5   : > { %4055 = vmatpush1.bf16.msra.mxu1 %v5786_v52  ;;  %5123 = vmatprep.subr.bf16.mxu0 %v5794_v58 }
 0x1a6   : > { %4056 = vmatprep.subr.bf16.mxu1 %v5793_v57 }
 0x1a7   : > { %4200 = vmatmul.mubr.bf16.vlgmr.msra.gmra.mrb[32].mxu0 %v7003_v50 }
 0x1a8   : > { %5124 = vmatpush3.bf16.msra.mxu0 %v5795_v60  ;;  %4240 = vmatprep.mubr.bf16.mxu0 %v6922_v25 }
 0x1a9   : > { %4057 = vmatpush1.bf16.msra.mxu1 %v5791_v59  ;;  %5125 = vmatprep.subr.bf16.mxu0 %v5799_v62  ;;  %v5854_v59 = vld [vmem:[%s7565_s2 + $0x624] ss:$20 sps:$4 sm:$0xff]  }
 0x1aa   : > { %4058 = vmatprep.subr.bf16.mxu1 %v5798_v61 }
 0x1ac   : > { %5126 = vmatpush3.bf16.msra.mxu0 %v5800_v9 }
 0x1ad   : > { %4059 = vmatpush1.bf16.msra.mxu1 %v5796_v63  ;;  %5127 = vmatprep.subr.bf16.mxu0 %v5804_v3  ;;  %v5857_v3 = vld [vmem:[%s7565_s2 + $0x64c] ss:$20 sps:$4 sm:$0xff]  }
 0x1ae   : > { %4060 = vmatprep.subr.bf16.mxu1 %v5803_v1  ;;  %v5852_v1 = vld [vmem:[%s7565_s2 + $0x620] ss:$20 sps:$4 sm:$0xff]  }
 0x1b0   : > { %5128 = vmatpush3.bf16.msra.mxu0 %v5805_v6 }
 0x1b1   : > { %4061 = vmatpush1.bf16.msra.mxu1 %v5801_v4  ;;  %5129 = vmatprep.subr.bf16.mxu0 %v5809_v8  ;;  %v5858_v8 = vld [vmem:[%s7565_s2 + $0x670] ss:$20 sps:$4 sm:$0xff]  }
 0x1b2   : > { %4062 = vmatprep.subr.bf16.mxu1 %v5808_v7  ;;  %v5860_v7 = vld [vmem:[%s7565_s2 + $0x674] ss:$20 sps:$4 sm:$0xff]  }
 0x1b4   : > { %5130 = vmatpush3.bf16.msra.mxu0 %v5810_v21  ;;  %v5861_v21 = vld [vmem:[%s7565_s2 + $0x698] ss:$20 sps:$4 sm:$0xff]  }
 0x1b5   : > { %4063 = vmatpush1.bf16.msra.mxu1 %v5806_v10  ;;  %5131 = vmatprep.subr.bf16.mxu0 %v5814_v2  ;;  %v5863_v10 = vld [vmem:[%s7565_s2 + $0x69c] ss:$20 sps:$4 sm:$0xff]   ;;  %v5864_v2 = vld [vmem:[%s7565_s2 + $0x6c0] ss:$20 sps:$4 sm:$0xff]  }
 0x1b6   : > { %4064 = vmatprep.subr.bf16.mxu1 %v5813_v11  ;;  %v5866_v11 = vld [vmem:[%s7565_s2 + $0x6c4] ss:$20 sps:$4 sm:$0xff]  }
 0x1b8   : > { %5132 = vmatpush3.bf16.msra.mxu0 %v5815_v14  ;;  %v5867_v14 = vld [vmem:[%s7565_s2 + $0x6e8] ss:$20 sps:$4 sm:$0xff]  }
 0x1b9   : > { %4065 = vmatpush1.bf16.msra.mxu1 %v5811_v13  ;;  %5133 = vmatprep.subr.bf16.mxu0 %v5819_v16  ;;  %v5869_v13 = vld [vmem:[%s7565_s2 + $0x6ec] ss:$20 sps:$4 sm:$0xff]   ;;  %v5870_v16 = vld [vmem:[%s7565_s2 + $0x710] ss:$20 sps:$4 sm:$0xff]  }
 0x1ba   : > { %4066 = vmatprep.subr.bf16.mxu1 %v5818_v15  ;;  %v5073_v26 = vpop.f32.mrb[16].mxu0  ;;  %v5872_v15 = vld [vmem:[%s7565_s2 + $0x714] ss:$20 sps:$4 sm:$0xff]  }
 0x1bb   : > { %v5074_v27 = vpop.f32.mrb[17].mxu0 }
 0x1bc   : > { %v5075_v18 = vadd.f32 %v5074_v27, %v5073_v26  ;;  %v5076_v0 = vpop.f32.mrb[18].mxu0  ;;  %5134 = vmatpush3.bf16.msra.mxu0 %v5820_v19  ;;  %v5878_v27 = vld [vmem:[%s7565_s2 + $0x764] ss:$20 sps:$4 sm:$0xff]  }
 0x1bd   : > { %4067 = vmatpush1.bf16.msra.mxu1 %v5816_v17  ;;  %v5077_v43 = vpop.f32.mrb[19].mxu0  ;;  %5135 = vmatprep.subr.bf16.mxu0 %v5824_v24  ;;  %v5875_v17 = vld [vmem:[%s7565_s2 + $0x73c] ss:$20 sps:$4 sm:$0xff]   ;;  %v5873_v24 = vld [vmem:[%s7565_s2 + $0x738] ss:$20 sps:$4 sm:$0xff]  }
 0x1be   : > { %4068 = vmatprep.subr.bf16.mxu1 %v5823_v23  ;;  %v2253_v31 = vadd.f32 %v5075_v18, %v7305_v49  ;;  %v5078_v33 = vadd.f32 %v5077_v43, %v5076_v0  ;;  %v5876_v0 = vld [vmem:[%s7565_s2 + $0x760] ss:$20 sps:$4 sm:$0xff]  }
 0x1c0   : > { %v2276_v34 = vrot.slane %v2253_v31, 4  ;;  %v2256_v35 = vadd.f32 %v5078_v33, %v7314_v56  ;;  %5136 = vmatpush3.bf16.msra.mxu0 %v5825_v29 }
 0x1c1   : > { %4069 = vmatpush1.bf16.msra.mxu1 %v5821_v28  ;;  %5137 = vmatprep.subr.bf16.mxu0 %v5829_v30 }
 0x1c2   : > { %4070 = vmatprep.subr.bf16.mxu1 %v5828_v5  ;;  %v2277_v40 = vrot.slane %v2256_v35, 4 }
 0x1c4   : > { %v2279_v41 = vsel %vm2278_vm1, %v2276_v34, %v2277_v40  ;;  %5138 = vmatpush3.bf16.msra.mxu0 %v5830_v36 }
 0x1c5   : > { %4071 = vmatpush1.bf16.msra.mxu1 %v5826_v12 }
 0x1c6   : > { %4083 = vmatprep.subr.bf16.mxu1 %v5833_v38 }
 0x1c7   : > { %4241 = vmatmul.mubr.bf16.vlgmr.msra.gmra.mrb[36].mxu0 %v7111_v37 }
 0x1c8   : > { %4073 = vmatmul.mubr.bf16.vlgmr.msra.gmra.mrb[12].mxu1 %v7003_v50  ;;  %v5842_v50 = vld [vmem:[%s7565_s2 + $0x584] ss:$20 sps:$4 sm:$0xff]  }
 0x1c9   : > { %4084 = vmatpush1.bf16.msra.mxu1 %v5831_v42  ;;  %4115 = vmatprep.mubr.bf16.mxu1 %v6922_v25  ;;  %v5840_v25 = vld [vmem:[%s7565_s2 + $0x580] ss:$20 sps:$4 sm:$0xff]  }
 0x1ca   : > { %4085 = vmatprep.subr.bf16.mxu1 %v5836_v22 }
 0x1cd   : > { %4086 = vmatpush1.bf16.msra.mxu1 %v5834_v44 }
 0x1ce   : > { %4087 = vmatprep.subr.bf16.mxu1 %v5839_v53 }
 0x1d1   : > { %4088 = vmatpush1.bf16.msra.mxu1 %v5837_v32 }
 0x1d2   : > { %4089 = vmatprep.subr.bf16.mxu1 %v5842_v50 }
 0x1d5   : > { %4090 = vmatpush1.bf16.msra.mxu1 %v5840_v25 }
 0x1d6   : > { %4091 = vmatprep.subr.bf16.mxu1 %v5845_v54 }
 0x1d9   : > { %4092 = vmatpush1.bf16.msra.mxu1 %v5843_v45 }
 0x1da   : > { %4093 = vmatprep.subr.bf16.mxu1 %v5848_v46 }
 0x1db   : > { %v2127_v49 = vpop.f32.mrb[4].mxu1 }
 0x1dc   : > { %v2129_v51 = vpop.f32.mrb[5].mxu1  ;;  %v2266_v56 = vrot.slane %v2127_v49, 2 }
 0x1dd   : > { %v2131_v52 = vpop.f32.mrb[6].mxu1  ;;  %4094 = vmatpush1.bf16.msra.mxu1 %v5846_v47  ;;  %v2271_v60 = vrot.slane %v2129_v51, 3 }
 0x1de   : > { %v2267_v57 = vrot.slane %v2131_v52, 2  ;;  %v2133_v58 = vpop.f32.mrb[7].mxu1  ;;  %4095 = vmatprep.subr.bf16.mxu1 %v5851_v48 }
 0x1df   : > { %v2272_v61 = vrot.slane %v2133_v58, 3 }
 0x1e0   : > { %v2269_v62 = vsel %vm2268_vm2, %v2266_v56, %v2267_v57 }
 0x1e1   : > { %v2270_v63 = vadd.f32 %v2269_v62, %v7116_v39  ;;  %v2274_v9 = vsel %vm2273_vm3, %v2271_v60, %v2272_v61  ;;  %4096 = vmatpush1.bf16.msra.mxu1 %v5849_v55  ;;  %v5855_v39 = vld [vmem:[%s7565_s2 + $0x648] ss:$20 sps:$4 sm:$0xff]  }
 0x1e2   : > { %4097 = vmatprep.subr.bf16.mxu1 %v5854_v59 }
 0x1e3   : > { %v2275_v4 = vadd.f32 %v2274_v9, %v2270_v63 }
 0x1e5   : > { %v7480_v6 = vadd.f32 %v2279_v41, %v2275_v4  ;;  %4098 = vmatpush1.bf16.msra.mxu1 %v5852_v1 }
 0x1e6   : > { %4099 = vmatprep.subr.bf16.mxu1 %v5857_v3 }
 0x1e9   : > { %4100 = vmatpush1.bf16.msra.mxu1 %v5855_v39  ;;  %v5904_v39 = vmov 1983009808  }
 0x1ea   : > { %4101 = vmatprep.subr.bf16.mxu1 %v5860_v7  ;;  %v4280_v7 = vunpack.c.l.s4 %v5904_v39 }
 0x1ed   : > { %4102 = vmatpush1.bf16.msra.mxu1 %v5858_v8  ;;  %v5008_v8 = vld [vmem:[%s7566_s3] ss:$0 sm:$0xff] }
 0x1ee   : > { %4103 = vmatprep.subr.bf16.mxu1 %v5863_v10  ;;  %v4272_v10 = vadd.f32 %v5008_v8, %v7480_v6 }
 0x1f1   : > { %4104 = vmatpush1.bf16.msra.mxu1 %v5861_v21  ;;  %v4281_v21 = vunpack.c.0.s8 %v4280_v7 }
 0x1f2   : > { %4105 = vmatprep.subr.bf16.mxu1 %v5866_v11  ;;  %v4274_v11 = vmax.f32 %v4272_v10, 0.0 }
 0x1f5   : > { %4106 = vmatpush1.bf16.msra.mxu1 %v5864_v2  ;;  %v4284_v2 = vsub.s32 %v4281_v21, %v7080_v20 }
 0x1f6   : > { %4107 = vmatprep.subr.bf16.mxu1 %v5869_v13 }
 0x1f7   : > { %v4285_v13 = vrot.slane %v4274_v11, %v4284_v2 }
 0x1f9   : > { %4108 = vmatpush1.bf16.msra.mxu1 %v5867_v14  ;;  %v4278_v14 = vcombine.high %v4274_v11, %v4274_v11 }
 0x1fa   : > { %4109 = vmatprep.subr.bf16.mxu1 %v5872_v15  ;;  %v3905_v19 = vpop.f32.mrb[20].mxu0  ;;  %v4293_v15 = vcombine.high %v4285_v13, %v4285_v13 }
 0x1fb   : > { %v3907_v23 = vpop.f32.mrb[21].mxu0 }
 0x1fc   : > { %v3909_v26 = vpop.f32.mrb[22].mxu0 }
 0x1fd   : > { %4110 = vmatpush1.bf16.msra.mxu1 %v5870_v16  ;;  %v3910_v18 = vpop.f32.mrb[23].mxu0  ;;  %v4292_v16 = vrot.slane %v4278_v14, %v4284_v2 }
 0x1fe   : > { %4111 = vmatprep.subr.bf16.mxu1 %v5875_v17  ;;  %v4328_v17 = vsel %vm4320_vm4, %v4293_v15, -inf }
 0x1ff   : > { %v4335_v26 = vsel %vm4320_vm4, %v4292_v16, -inf }
 0x200   : > { %v4336_v6 = vrot.slane %v4335_v26, 4 }
 0x201   : > { %4112 = vmatpush1.bf16.msra.mxu1 %v5873_v24  ;;  %v4329_v24 = vrot.slane %v4328_v17, 4 }
 0x202   : > { %4113 = vmatprep.subr.bf16.mxu1 %v5878_v27 }
 0x205   : > { %4114 = vmatpush1.bf16.msra.mxu1 %v5876_v0 }
 0x208   : > { %4116 = vmatmul.mubr.bf16.vlgmr.msra.gmra.mrb[12].mxu1 %v7111_v37 }
 0x21b   : > { %v3947_v28 = vpop.f32.mrb[8].mxu1 }
 0x21c   : > { %v3948_v29 = vadd.f32 %v3947_v28, %v3905_v19  ;;  %v3949_v43 = vpop.f32.mrb[9].mxu1  ;;  %v4321_v19 = vsel %vm4320_vm4, %v4285_v13, -inf  ;;  %v4330_v28 = vmax.f32 %v4328_v17, %v4329_v24 }
 0x21d   : > { %v3950_v5 = vadd.f32 %v3949_v43, %v3907_v23  ;;  %v3951_v30 = vpop.f32.mrb[10].mxu1  ;;  %v4294_v23 = vcombine.high %v4292_v16, %v4292_v16  ;;  %v4322_v27 = vrot.slane %v4321_v19, 4 }
 0x21e   : > { %v3952_v31 = vpop.f32.mrb[11].mxu1 }
 0x21f   : > { %v3953_v33 = vadd.f32 %v3952_v31, %v3910_v18 }
 0x23a   : > { %v3989_v34 = vpop.f32.mrb[24].mxu0 }
 0x23b   : > { %v3990_v35 = vadd.f32 %v3989_v34, %v3948_v29  ;;  %v3991_v12 = vpop.f32.mrb[25].mxu0  ;;  %v4342_v29 = vsel %vm4320_vm4, %v4294_v23, -inf }
 0x23c   : > { %v3992_v36 = vadd.f32 %v3991_v12, %v3950_v5  ;;  %v3993_v38 = vpop.f32.mrb[26].mxu0  ;;  %v4337_v12 = vmax.f32 %v4335_v26, %v4336_v6 }
 0x23d   : > { %v3994_v40 = vpop.f32.mrb[27].mxu0 }
 0x23e   : > { %v3995_v41 = vadd.f32 %v3994_v40, %v3953_v33  ;;  %v4249_v42 = vrot.slane %v3992_v36, 1  ;;  %v4323_v33 = vmax.f32 %v4321_v19, %v4322_v27  ;;  %v4343_v36 = vrot.slane %v4342_v29, 4 }
 0x23f   : > { %v4331_v40 = vrot.slane %v4330_v28, 2 }
 0x240   : > { %v4250_v22 = vrot.slane %v3995_v41, 1 }
 0x242   : > { %v4251_v44 = vsel %vm2263_vm0, %v4249_v42, %v4250_v22  ;;  %v4324_v22 = vrot.slane %v4323_v33, 2 }
 0x243   : > { %v4252_v37 = vadd.f32 %v4251_v44, %v3990_v35 }
 0x25a   : > { %v5095_v53 = vpop.f32.mrb[28].mxu0 }
 0x25b   : > { %v5096_v32 = vpop.f32.mrb[29].mxu0 }
 0x25c   : > { %v5097_v50 = vadd.f32 %v5096_v32, %v5095_v53  ;;  %v5098_v25 = vpop.f32.mrb[30].mxu0  ;;  %v4338_v53 = vrot.slane %v4337_v12, 2  ;;  %v4344_v32 = vmax.f32 %v4342_v29, %v4343_v36 }
 0x25d   : > { %v5099_v54 = vpop.f32.mrb[31].mxu0 }
 0x25e   : > { %v5100_v45 = vadd.f32 %v5099_v54, %v5098_v25  ;;  %v4325_v54 = vmax.f32 %v4323_v33, %v4324_v22 }
 0x27a   : > { %v5117_v46 = vpop.f32.mrb[32].mxu0 }
 0x27b   : > { %v5118_v47 = vpop.f32.mrb[33].mxu0 }
 0x27c   : > { %v5119_v48 = vadd.f32 %v5118_v47, %v5117_v46  ;;  %v5120_v49 = vpop.f32.mrb[34].mxu0  ;;  %v4339_v46 = vmax.f32 %v4337_v12, %v4338_v53  ;;  %v4345_v47 = vrot.slane %v4344_v32, 2 }
 0x27d   : > { %v5121_v51 = vpop.f32.mrb[35].mxu0 }
 0x27e   : > { %v4202_v52 = vadd.f32 %v5119_v48, %v5097_v50  ;;  %v5122_v55 = vadd.f32 %v5121_v51, %v5120_v49  ;;  %v4332_v50 = vmax.f32 %v4330_v28, %v4331_v40  ;;  %v4326_v51 = vrot.slane %v4325_v54, 1 }
 0x280   : > { %v4205_v56 = vadd.f32 %v5122_v55, %v5100_v45  ;;  %v4333_v48 = vrot.slane %v4332_v50, 1 }
 0x29a   : > { %v5139_v57 = vpop.f32.mrb[36].mxu0 }
 0x29b   : > { %v5140_v58 = vpop.f32.mrb[37].mxu0 }
 0x29c   : > { %v5141_v59 = vadd.f32 %v5140_v58, %v5139_v57  ;;  %v5142_v60 = vpop.f32.mrb[38].mxu0  ;;  %v4334_v57 = vmax.f32 %v4332_v50, %v4333_v48 }
 0x29d   : > { %v5143_v61 = vpop.f32.mrb[39].mxu0 }
 0x29e   : > { %v4243_v62 = vadd.f32 %v5141_v59, %v4202_v52  ;;  %v5144_v63 = vadd.f32 %v5143_v61, %v5142_v60  ;;  %v4327_v61 = vmax.f32 %v4325_v54, %v4326_v51 }
 0x2a0   : > { %v4261_v9 = vrot.slane %v4243_v62, 4  ;;  %v4246_v1 = vadd.f32 %v5144_v63, %v4205_v56  ;;  %v4340_v56 = vrot.slane %v4339_v46, 1 }
 0x2a2   : > { %v4262_v3 = vrot.slane %v4246_v1, 4  ;;  %v4341_v39 = vmax.f32 %v4339_v46, %v4340_v56 }
 0x2a4   : > { %v4263_v4 = vsel %vm2278_vm1, %v4261_v9, %v4262_v3 }
 0x2db   : > { %v4117_v18 = vpop.f32.mrb[12].mxu1 }
 0x2dc   : > { %v4119_v0 = vpop.f32.mrb[13].mxu1  ;;  %v4253_v5 = vrot.slane %v4117_v18, 2 }
 0x2dd   : > { %v4121_v43 = vpop.f32.mrb[14].mxu1  ;;  %v4257_v34 = vrot.slane %v4119_v0, 3 }
 0x2de   : > { %v4254_v30 = vrot.slane %v4121_v43, 2  ;;  %v4123_v31 = vpop.f32.mrb[15].mxu1 }
 0x2df   : > { %v4258_v35 = vrot.slane %v4123_v31, 3 }
 0x2e0   : > { %v4255_v38 = vsel %vm2268_vm2, %v4253_v5, %v4254_v30 }
 0x2e1   : > { %v4256_v41 = vadd.f32 %v4255_v38, %v4252_v37  ;;  %v4259_v42 = vsel %vm2273_vm3, %v4257_v34, %v4258_v35  ;;  %v4346_v37 = vmax.f32 %v4344_v32, %v4345_v47 }
 0x2e3   : > { %v4260_v44 = vadd.f32 %v4259_v42, %v4256_v41  ;;  %v4347_v7 = vrot.slane %v4346_v37, 1 }
 0x2e5   : > { %v4264_v25 = vadd.f32 %v4263_v4, %v4260_v44  ;;  %v4348_v19 = vmax.f32 %v4346_v37, %v4347_v7 }
 0x2e7   : > { %v4273_v45 = vadd.f32 %v5008_v8, %v4264_v25  ;;  %v4386_v8 = vsel %vm4385_vm5, %v4334_v57, %v4327_v61 }
 0x2e8   : > { %v4388_v23 = vsel %vm4387_vm6, %v4341_v39, %v4386_v8 }
 0x2e9   : > { %v4275_v49 = vmax.f32 %v4273_v45, 0.0  ;;  %v4390_v43 = vsel %vm4389_vm7, %v4348_v19, %v4388_v23 }
 0x2eb   : > { %v4295_v52 = vcombine.high %v4275_v49, %v4275_v49  ;;  %v4302_v55 = vrot.slane %v4275_v49, %v4284_v2 }
 0x2ed   : > { %v4309_v20 = vrot.slane %v4295_v52, %v4284_v2  ;;  %v4310_v58 = vcombine.high %v4302_v55, %v4302_v55  ;;  %v4349_v59 = vsel %vm4320_vm4, %v4302_v55, -inf }
 0x2ee   : > { %v4350_v60 = vrot.slane %v4349_v59, 4 }
 0x2ef   : > { %v4311_v62 = vcombine.high %v4309_v20, %v4309_v20  ;;  %v4356_v63 = vsel %vm4320_vm4, %v4310_v58, -inf  ;;  %v4363_v9 = vsel %vm4320_vm4, %v4309_v20, -inf }
 0x2f0   : > { %v4351_v1 = vmax.f32 %v4349_v59, %v4350_v60  ;;  %v4357_v3 = vrot.slane %v4356_v63, 4  ;;  %v4364_v4 = vrot.slane %v4363_v9, 4 }
 0x2f1   : > { %v4370_v10 = vsel %vm4320_vm4, %v4311_v62, -inf }
 0x2f2   : > { %v4352_v21 = vrot.slane %v4351_v1, 2  ;;  %v4358_v11 = vmax.f32 %v4356_v63, %v4357_v3  ;;  %v4365_v2 = vmax.f32 %v4363_v9, %v4364_v4  ;;  %v4371_v13 = vrot.slane %v4370_v10, 4 }
 0x2f4   : > { %v4353_v14 = vmax.f32 %v4351_v1, %v4352_v21  ;;  %v4359_v15 = vrot.slane %v4358_v11, 2  ;;  %v4366_v16 = vrot.slane %v4365_v2, 2  ;;  %v4372_v17 = vmax.f32 %v4370_v10, %v4371_v13 }
 0x2f6   : > { %v4354_v24 = vrot.slane %v4353_v14, 1  ;;  %v4360_v26 = vmax.f32 %v4358_v11, %v4359_v15  ;;  %v4367_v27 = vmax.f32 %v4365_v2, %v4366_v16  ;;  %v4373_v18 = vrot.slane %v4372_v17, 2 }
 0x2f8   : > { %v4355_v6 = vmax.f32 %v4353_v14, %v4354_v24  ;;  %v4361_v0 = vrot.slane %v4360_v26, 1  ;;  %v4368_v28 = vrot.slane %v4367_v27, 1  ;;  %v4374_v29 = vmax.f32 %v4372_v17, %v4373_v18 }
 0x2fa   : > { %v4362_v5 = vmax.f32 %v4360_v26, %v4361_v0  ;;  %v4369_v30 = vmax.f32 %v4367_v27, %v4368_v28  ;;  %v4375_v31 = vrot.slane %v4374_v29, 1  ;;  %v4392_v33 = vsel %vm4391_vm8, %v4355_v6, %v4390_v43 }
 0x2fc   : > { %v4376_v34 = vmax.f32 %v4374_v29, %v4375_v31  ;;  %v4394_v35 = vsel %vm4393_vm9, %v4362_v5, %v4392_v33 }
 0x2fd   : > { %v4396_v12 = vsel %vm4395_vm10, %v4369_v30, %v4394_v35 }
 0x2fe   : > { %v4398_v36 = vsel %vm4397_vm11, %v4376_v34, %v4396_v12 }
 0x2ff   : > { %4400 = vst [vmem:[%s307_s28] sm:$0xff] %v4398_v36 }
 0x300 PF: > { %s14_s17 = sadd.s32 1, %s5902_s17   ;;  %s7568_s15 = smov %s5898_s16 }
 0x301   : > { %p11_p5 = scmp.ge.s32.totalorder %s14_s17, 4   ;;  %s7569_s16 = smov %s7571_s18 }
 0x303   :  { %13 = sbr.rel (!%p11_p5) target bundleno = 2 (0x2), region = 69 }

</bundles_post_ra>
